<compile_context>
chip_gen: v5e
topology: v5e:2x2
jax: 0.10.0
libtpu: 0.0.40
codegen_flags: <defaults>
</compile_context>

<pallas_src>
import jax
import jax.numpy as jnp
from jax.experimental import pallas as pl
from jax.experimental import pallas as pl  # noqa: F811 (kept explicit)
from jax.experimental.pallas import tpu as pltpu  # noqa: F401  (TPU backend assumed)
from jax.scipy.linalg import block_diag

# ----------------------------- config -----------------------------------------
HIDDEN_DIM = 16
NUM_HEADS = 2
HD = HIDDEN_DIM * NUM_HEADS          # 32
EGAT_LAYERS = 2
NUM_NODE_FEATS = 17
NUM_EDGE_FEATS = 15
ADDON_FEATS = 4
MLP1_OUT, MLP2_OUT, MLP3_OUT = 32, 16, 1

B = 2                                # graphs (reactions) in the batch
NODES_PER_GRAPH = 4
N_NODES = B * NODES_PER_GRAPH        # 8
N_EDGES = B * 2 * NODES_PER_GRAPH    # 16 (bidirectional ring per graph)
N2 = 2 * N_NODES                     # 16  (R nodes stacked above P nodes)
E2 = 2 * N_EDGES                     # 32


# ----------------------------- pallas helpers ----------------------------------
def _full_spec(shape):
    nd = len(shape)
    return pl.BlockSpec(shape, lambda *_, nd=nd: (0,) * nd)


def _mm(a, b):
    return jnp.dot(a, b, preferred_element_type=jnp.float32)


# ----------------------------- fused kernel ------------------------------------
def _egat(nfeat, efeat, S2, D2, Dt2, deg_inv, head_expand,
          w_ni, w_nj, w_fij, b_edge, attn_block, w_node):
    """One EGATConv layer (DGL semantics) on the stacked R+P block-diagonal graph."""
    # f_out = leaky_relu(fc_ni(src) + fc_nj(dst) + fc_fij(e) + bias)
    f_pre = (_mm(S2, _mm(nfeat, w_ni)) + _mm(D2, _mm(nfeat, w_nj))
             + _mm(efeat, w_fij) + b_edge)                       # (E2, HD)
    f_out = jnp.where(f_pre > 0.0, f_pre, 0.2 * f_pre)           # leaky_relu(0.2)

    # attention scores for BOTH heads with a single MXU matmul
    scores = _mm(f_out, attn_block)                              # (E2, H)

    # edge-softmax over incoming edges of each destination node.
    # Shift by the per-destination MEAN (exact: softmax is shift-invariant per
    # group). Since the per-group max >= mean, every group keeps exp(.) >= 1,
    # so the denominator cannot underflow to 0 (no 0/0), unlike a global max.
    mean_n = _mm(Dt2, scores) * deg_inv                          # (N2, H)
    ex = jnp.exp(scores - _mm(D2, mean_n))                       # (E2, H)
    den_e = _mm(D2, _mm(Dt2, ex))                                # (E2, H)
    a = ex / jnp.maximum(den_e, 1e-20)                           # (E2, H)

    # expand each head's coefficient across its 16 feature lanes (selector
    # matmul), then one message multiply and one full-width aggregation matmul.
    a_full = _mm(a, head_expand)                                 # (E2, HD)
    h_src = _mm(S2, _mm(nfeat, w_node))                          # (E2, HD)
    node_out = _mm(Dt2, h_src * a_full)                          # (N2, HD)
    return node_out, f_out


def fused_forward_kernel(
        n_ref, e_ref, S2_ref, D2_ref, Dt2_ref, deginv_ref,
        mndiff_ref, mediff_ref, cntn_ref, cnte_ref, radd_ref, padd_ref,
        hexp_ref,
        # egat1
        wni1_ref, wnj1_ref, wfij1_ref, be1_ref, attn1_ref, wnode1_ref,
        # egat2
        wni2_ref, wnj2_ref, wfij2_ref, be2_ref, attn2_ref, wnode2_ref,
        # agg_N_feats / agg_E_feats
        aggnw_ref, aggnb_ref, aggew_ref, aggeb_ref,
        # mlp1 (split) / mlp2 / mlp3
        w1gn_ref, w1ge_ref, w1add_ref, b1_ref,
        w2_ref, b2_ref, w3_ref, b3_ref,
        out_ref):
    S2, D2, Dt2 = S2_ref[...], D2_ref[...], Dt2_ref[...]
    deg_inv = deginv_ref[...]
    hexp = hexp_ref[...]

    # egat1 on the stacked [R ; P] graphs
    nf, ef = _egat(n_ref[...], e_ref[...], S2, D2, Dt2, deg_inv, hexp,
                   wni1_ref[...], wnj1_ref[...], wfij1_ref[...],
                   be1_ref[...], attn1_ref[...], wnode1_ref[...])
    # egat2 repeated (EGAT_layers - 1) times
    for _ in range(EGAT_LAYERS - 1):
        nf, ef = _egat(nf, ef, S2, D2, Dt2, deg_inv, hexp,
                       wni2_ref[...], wnj2_ref[...], wfij2_ref[...],
                       be2_ref[...], attn2_ref[...], wnode2_ref[...])

    # Aggregate == 'Sub' + dgl.unbatch per-graph sum, fused:
    #   Gn[b] = sum_{i in graph b} ((Pn_i - Rn_i) @ Wn + bn)
    #         = (MnDiff @ nf) @ Wn + count_n[b] * bn
    gn = _mm(mndiff_ref[...], nf)                                # (B, HD)
    ge = _mm(mediff_ref[...], ef)                                # (B, HD)
    Gn = _mm(gn, aggnw_ref[...]) + cntn_ref[...] * aggnb_ref[...]
    Ge = _mm(ge, aggew_ref[...]) + cnte_ref[...] * aggeb_ref[...]

    # AddOnAgg == False: concat(G_features, Padd - Radd) folded into split mlp1
    add_diff = padd_ref[...] - radd_ref[...]                     # (B, 4)
    h = (_mm(Gn, w1gn_ref[...]) + _mm(Ge, w1ge_ref[...])
         + _mm(add_diff, w1add_ref[...]) + b1_ref[...])
    h = _mm(h, w2_ref[...]) + b2_ref[...]
    # Embed == 0, getattentionmaps == False -> return x only
    out_ref[...] = _mm(h, w3_ref[...]) + b3_ref[...]


# ----------------------------- parameter init ----------------------------------
def _attn_to_block(attn):
    """(H, hidden) attention params -> (HD, H) block-diagonal score matrix."""
    blk = jnp.zeros((HD, NUM_HEADS), jnp.float32)
    for h in range(NUM_HEADS):
        blk = blk.at[h * HIDDEN_DIM:(h + 1) * HIDDEN_DIM, h].set(attn[h])
    return blk


def _head_expand():
    """(H, HD) selector: expands per-head attention coeff across its 16 lanes."""
    he = jnp.zeros((NUM_HEADS, HD), jnp.float32)
    for h in range(NUM_HEADS):
        he = he.at[h, h * HIDDEN_DIM:(h + 1) * HIDDEN_DIM].set(1.0)
    return he


def init_egat_params(key, in_node, in_edge):
    ks = jax.random.split(key, 5)
    s = 0.1
    attn = s * jax.random.normal(ks[3], (NUM_HEADS, HIDDEN_DIM), jnp.float32)
    return dict(
        w_ni=s * jax.random.normal(ks[0], (in_node, HD), jnp.float32),
        w_nj=s * jax.random.normal(ks[1], (in_node, HD), jnp.float32),
        w_fij=s * jax.random.normal(ks[2], (in_edge, HD), jnp.float32),
        b_edge=jnp.zeros((1, HD), jnp.float32),   # DGL EGATConv zero-inits edge bias
        attn_block=_attn_to_block(attn),
        w_node=s * jax.random.normal(ks[4], (in_node, HD), jnp.float32),
    )


def init_linear(key, fin, fout):
    k1, k2 = jax.random.split(key)
    s = 0.1
    return dict(w=s * jax.random.normal(k1, (fin, fout), jnp.float32),
                b=s * jax.random.normal(k2, (1, fout), jnp.float32))


def init_params(key):
    ks = jax.random.split(key, 7)
    return dict(
        egat1=init_egat_params(ks[0], NUM_NODE_FEATS, NUM_EDGE_FEATS),
        egat2=init_egat_params(ks[1], HD, HD),
        agg_n=init_linear(ks[2], HD, HD),
        agg_e=init_linear(ks[3], HD, HD),
        mlp1=init_linear(ks[4], 2 * HD + ADDON_FEATS, MLP1_OUT),
        mlp2=init_linear(ks[5], MLP1_OUT, MLP2_OUT),
        mlp3=init_linear(ks[6], MLP2_OUT, MLP3_OUT),
        head_expand=_head_expand(),
    )


# ----------------------------- graph construction -------------------------------
def build_batched_graph():
    """B bidirectional 4-node rings, block-diagonal batched like DGL."""
    src, dst = [], []
    for g in range(B):
        off = g * NODES_PER_GRAPH
        for i in range(NODES_PER_GRAPH):
            j = (i + 1) % NODES_PER_GRAPH
            src += [off + i, off + j]
            dst += [off + j, off + i]
    src = jnp.array(src, jnp.int32)
    dst = jnp.array(dst, jnp.int32)
    S = jax.nn.one_hot(src, N_NODES, dtype=jnp.float32)           # (E, N)
    D = jax.nn.one_hot(dst, N_NODES, dtype=jnp.float32)           # (E, N)
    node_graph = jnp.repeat(jnp.arange(B), NODES_PER_GRAPH)
    edge_graph = jnp.repeat(jnp.arange(B), 2 * NODES_PER_GRAPH)
    Mn = jax.nn.one_hot(node_graph, B, dtype=jnp.float32).T       # (B, N)
    Me = jax.nn.one_hot(edge_graph, B, dtype=jnp.float32).T       # (B, E)
    return S, D, Mn, Me


def build_fused_graph_inputs(S, D, Mn, Me):
    """Stack R+P wiring block-diagonally; precompute transposes / degrees / readout."""
    S2 = block_diag(S, S).astype(jnp.float32)                     # (2E, 2N)
    D2 = block_diag(D, D).astype(jnp.float32)                     # (2E, 2N)
    Dt2 = D2.T                                                    # (2N, 2E), no in-kernel transpose
    deg = jnp.sum(Dt2, axis=1, keepdims=True)                     # in-degree per node
    deg_inv = jnp.where(deg > 0, 1.0 / jnp.maximum(deg, 1.0), 0.0)
    MnDiff = jnp.concatenate([-Mn, Mn], axis=1)                   # (B, 2N): -R part, +P part
    MeDiff = jnp.concatenate([-Me, Me], axis=1)                   # (B, 2E)
    cnt_n = jnp.sum(Mn, axis=1, keepdims=True)                    # (B, 1) nodes per graph
    cnt_e = jnp.sum(Me, axis=1, keepdims=True)                    # (B, 1) edges per graph
    return S2, D2, Dt2, deg_inv, MnDiff, MeDiff, cnt_n, cnt_e


# ----------------------------- forward ------------------------------------------
def forward(Rn_x, Re_x, Pn_x, Pe_x, graph_inputs, Radd, Padd, params):
    S2, D2, Dt2, deg_inv, MnDiff, MeDiff, cnt_n, cnt_e = graph_inputs
    n_stack = jnp.concatenate([Rn_x, Pn_x], axis=0)               # (2N, F_node)
    e_stack = jnp.concatenate([Re_x, Pe_x], axis=0)               # (2E, F_edge)
    e1, e2 = params["egat1"], params["egat2"]
    w1 = params["mlp1"]["w"]                                      # (2*HD + 4, 32), split below

    args = [
        n_stack, e_stack, S2, D2, Dt2, deg_inv,
        MnDiff, MeDiff, cnt_n, cnt_e, Radd, Padd,
        params["head_expand"],
        e1["w_ni"], e1["w_nj"], e1["w_fij"], e1["b_edge"], e1["attn_block"], e1["w_node"],
        e2["w_ni"], e2["w_nj"], e2["w_fij"], e2["b_edge"], e2["attn_block"], e2["w_node"],
        params["agg_n"]["w"], params["agg_n"]["b"],
        params["agg_e"]["w"], params["agg_e"]["b"],
        w1[:HD], w1[HD:2 * HD], w1[2 * HD:], params["mlp1"]["b"],
        params["mlp2"]["w"], params["mlp2"]["b"],
        params["mlp3"]["w"], params["mlp3"]["b"],
    ]
    return pl.pallas_call(
        fused_forward_kernel,
        out_shape=jax.ShapeDtypeStruct((B, MLP3_OUT), jnp.float32),
        in_specs=[_full_spec(a.shape) for a in args],
        out_specs=_full_spec((B, MLP3_OUT)),
    )(*args)


# ----------------------------- main ----------------------------------------------
if __name__ == "__main__":
    key = jax.random.PRNGKey(0)
    k_param, k_rn, k_re, k_pn, k_pe, k_ra, k_pa = jax.random.split(key, 7)

    params = init_params(k_param)
    S, D, Mn, Me = build_batched_graph()
    graph_inputs = build_fused_graph_inputs(S, D, Mn, Me)

    Rn_x = jax.random.normal(k_rn, (N_NODES, NUM_NODE_FEATS), jnp.float32)
    Re_x = jax.random.normal(k_re, (N_EDGES, NUM_EDGE_FEATS), jnp.float32)
    Pn_x = jax.random.normal(k_pn, (N_NODES, NUM_NODE_FEATS), jnp.float32)
    Pe_x = jax.random.normal(k_pe, (N_EDGES, NUM_EDGE_FEATS), jnp.float32)
    Radd = jax.random.normal(k_ra, (B, ADDON_FEATS), jnp.float32)
    Padd = jax.random.normal(k_pa, (B, ADDON_FEATS), jnp.float32)

    out = forward(Rn_x, Re_x, Pn_x, Pe_x, graph_inputs, Radd, Padd, params)
    out = jax.block_until_ready(out)
    assert out.shape == (B, MLP3_OUT) and out.dtype == jnp.float32
    assert bool(jnp.all(jnp.isfinite(out)))
    print("KERNEL_OK")
</pallas_src>

<mosaic_0001>
module attributes {stable_mosaic.version = 11 : i64} {
  func.func @fused_forward_kernel(%arg0: memref<16x17xf32, #tpu.memory_space<vmem>>, %arg1: memref<32x15xf32, #tpu.memory_space<vmem>>, %arg2: memref<32x16xf32, #tpu.memory_space<vmem>>, %arg3: memref<32x16xf32, #tpu.memory_space<vmem>>, %arg4: memref<16x32xf32, #tpu.memory_space<vmem>>, %arg5: memref<16x1xf32, #tpu.memory_space<vmem>>, %arg6: memref<2x16xf32, #tpu.memory_space<vmem>>, %arg7: memref<2x32xf32, #tpu.memory_space<vmem>>, %arg8: memref<2x1xf32, #tpu.memory_space<vmem>>, %arg9: memref<2x1xf32, #tpu.memory_space<vmem>>, %arg10: memref<2x4xf32, #tpu.memory_space<vmem>>, %arg11: memref<2x4xf32, #tpu.memory_space<vmem>>, %arg12: memref<2x32xf32, #tpu.memory_space<vmem>>, %arg13: memref<17x32xf32, #tpu.memory_space<vmem>>, %arg14: memref<17x32xf32, #tpu.memory_space<vmem>>, %arg15: memref<15x32xf32, #tpu.memory_space<vmem>>, %arg16: memref<1x32xf32, #tpu.memory_space<vmem>>, %arg17: memref<32x2xf32, #tpu.memory_space<vmem>>, %arg18: memref<17x32xf32, #tpu.memory_space<vmem>>, %arg19: memref<32x32xf32, #tpu.memory_space<vmem>>, %arg20: memref<32x32xf32, #tpu.memory_space<vmem>>, %arg21: memref<32x32xf32, #tpu.memory_space<vmem>>, %arg22: memref<1x32xf32, #tpu.memory_space<vmem>>, %arg23: memref<32x2xf32, #tpu.memory_space<vmem>>, %arg24: memref<32x32xf32, #tpu.memory_space<vmem>>, %arg25: memref<32x32xf32, #tpu.memory_space<vmem>>, %arg26: memref<1x32xf32, #tpu.memory_space<vmem>>, %arg27: memref<32x32xf32, #tpu.memory_space<vmem>>, %arg28: memref<1x32xf32, #tpu.memory_space<vmem>>, %arg29: memref<32x32xf32, #tpu.memory_space<vmem>>, %arg30: memref<32x32xf32, #tpu.memory_space<vmem>>, %arg31: memref<4x32xf32, #tpu.memory_space<vmem>>, %arg32: memref<1x32xf32, #tpu.memory_space<vmem>>, %arg33: memref<32x16xf32, #tpu.memory_space<vmem>>, %arg34: memref<1x16xf32, #tpu.memory_space<vmem>>, %arg35: memref<16x1xf32, #tpu.memory_space<vmem>>, %arg36: memref<1x1xf32, #tpu.memory_space<vmem>>, %arg37: memref<2x1xf32, #tpu.memory_space<vmem>>) attributes {dimension_semantics = [], scalar_prefetch = 0 : i64, scratch_operands = 0 : i64, tpu.core_type = #tpu.core_type<tc>} {
    %c0 = arith.constant 0 : index
    %c0_0 = arith.constant 0 : index
    %0 = vector.load %arg2[%c0, %c0_0] : memref<32x16xf32, #tpu.memory_space<vmem>>, vector<32x16xf32>
    %c0_1 = arith.constant 0 : index
    %c0_2 = arith.constant 0 : index
    %1 = vector.load %arg3[%c0_1, %c0_2] : memref<32x16xf32, #tpu.memory_space<vmem>>, vector<32x16xf32>
    %c0_3 = arith.constant 0 : index
    %c0_4 = arith.constant 0 : index
    %2 = vector.load %arg4[%c0_3, %c0_4] : memref<16x32xf32, #tpu.memory_space<vmem>>, vector<16x32xf32>
    %c0_5 = arith.constant 0 : index
    %c0_6 = arith.constant 0 : index
    %3 = vector.load %arg5[%c0_5, %c0_6] : memref<16x1xf32, #tpu.memory_space<vmem>>, vector<16x1xf32>
    %c0_7 = arith.constant 0 : index
    %c0_8 = arith.constant 0 : index
    %4 = vector.load %arg12[%c0_7, %c0_8] : memref<2x32xf32, #tpu.memory_space<vmem>>, vector<2x32xf32>
    %c0_9 = arith.constant 0 : index
    %c0_10 = arith.constant 0 : index
    %5 = vector.load %arg0[%c0_9, %c0_10] : memref<16x17xf32, #tpu.memory_space<vmem>>, vector<16x17xf32>
    %c0_11 = arith.constant 0 : index
    %c0_12 = arith.constant 0 : index
    %6 = vector.load %arg1[%c0_11, %c0_12] : memref<32x15xf32, #tpu.memory_space<vmem>>, vector<32x15xf32>
    %c0_13 = arith.constant 0 : index
    %c0_14 = arith.constant 0 : index
    %7 = vector.load %arg13[%c0_13, %c0_14] : memref<17x32xf32, #tpu.memory_space<vmem>>, vector<17x32xf32>
    %c0_15 = arith.constant 0 : index
    %c0_16 = arith.constant 0 : index
    %8 = vector.load %arg14[%c0_15, %c0_16] : memref<17x32xf32, #tpu.memory_space<vmem>>, vector<17x32xf32>
    %c0_17 = arith.constant 0 : index
    %c0_18 = arith.constant 0 : index
    %9 = vector.load %arg15[%c0_17, %c0_18] : memref<15x32xf32, #tpu.memory_space<vmem>>, vector<15x32xf32>
    %c0_19 = arith.constant 0 : index
    %c0_20 = arith.constant 0 : index
    %10 = vector.load %arg16[%c0_19, %c0_20] : memref<1x32xf32, #tpu.memory_space<vmem>>, vector<1x32xf32>
    %c0_21 = arith.constant 0 : index
    %c0_22 = arith.constant 0 : index
    %11 = vector.load %arg17[%c0_21, %c0_22] : memref<32x2xf32, #tpu.memory_space<vmem>>, vector<32x2xf32>
    %c0_23 = arith.constant 0 : index
    %c0_24 = arith.constant 0 : index
    %12 = vector.load %arg18[%c0_23, %c0_24] : memref<17x32xf32, #tpu.memory_space<vmem>>, vector<17x32xf32>
    %cst = arith.constant dense<0.000000e+00> : vector<16x32xf32>
    %13 = tpu.matmul %5, %7, %cst {dimension_numbers = #tpu.dot_dimension_numbers<[1], [0], [0], [1], [0, 0, 1, 1], [], []>} : vector<16x17xf32>, vector<17x32xf32>, vector<16x32xf32> -> vector<16x32xf32>
    %cst_25 = arith.constant dense<0.000000e+00> : vector<32x32xf32>
    %14 = tpu.matmul %0, %13, %cst_25 {dimension_numbers = #tpu.dot_dimension_numbers<[1], [0], [0], [1], [0, 0, 1, 1], [], []>} : vector<32x16xf32>, vector<16x32xf32>, vector<32x32xf32> -> vector<32x32xf32>
    %cst_26 = arith.constant dense<0.000000e+00> : vector<16x32xf32>
    %15 = tpu.matmul %5, %8, %cst_26 {dimension_numbers = #tpu.dot_dimension_numbers<[1], [0], [0], [1], [0, 0, 1, 1], [], []>} : vector<16x17xf32>, vector<17x32xf32>, vector<16x32xf32> -> vector<16x32xf32>
    %cst_27 = arith.constant dense<0.000000e+00> : vector<32x32xf32>
    %16 = tpu.matmul %1, %15, %cst_27 {dimension_numbers = #tpu.dot_dimension_numbers<[1], [0], [0], [1], [0, 0, 1, 1], [], []>} : vector<32x16xf32>, vector<16x32xf32>, vector<32x32xf32> -> vector<32x32xf32>
    %17 = arith.addf %14, %16 : vector<32x32xf32>
    %cst_28 = arith.constant dense<0.000000e+00> : vector<32x32xf32>
    %18 = tpu.matmul %6, %9, %cst_28 {dimension_numbers = #tpu.dot_dimension_numbers<[1], [0], [0], [1], [0, 0, 1, 1], [], []>} : vector<32x15xf32>, vector<15x32xf32>, vector<32x32xf32> -> vector<32x32xf32>
    %19 = arith.addf %17, %18 : vector<32x32xf32>
    %20 = vector.broadcast %10 : vector<1x32xf32> to vector<32x32xf32>
    %21 = arith.addf %19, %20 : vector<32x32xf32>
    %cst_29 = arith.constant 0.000000e+00 : f32
    %22 = vector.broadcast %cst_29 : f32 to vector<32x32xf32>
    %23 = arith.cmpf ogt, %21, %22 : vector<32x32xf32>
    %cst_30 = arith.constant 2.000000e-01 : f32
    %24 = vector.broadcast %cst_30 : f32 to vector<32x32xf32>
    %25 = arith.mulf %24, %21 : vector<32x32xf32>
    %26 = arith.select %23, %21, %25 : vector<32x32xi1>, vector<32x32xf32>
    %cst_31 = arith.constant dense<0.000000e+00> : vector<32x2xf32>
    %27 = tpu.matmul %26, %11, %cst_31 {dimension_numbers = #tpu.dot_dimension_numbers<[1], [0], [0], [1], [0, 0, 1, 1], [], []>} : vector<32x32xf32>, vector<32x2xf32>, vector<32x2xf32> -> vector<32x2xf32>
    %cst_32 = arith.constant dense<0.000000e+00> : vector<16x2xf32>
    %28 = tpu.matmul %2, %27, %cst_32 {dimension_numbers = #tpu.dot_dimension_numbers<[1], [0], [0], [1], [0, 0, 1, 1], [], []>} : vector<16x32xf32>, vector<32x2xf32>, vector<16x2xf32> -> vector<16x2xf32>
    %29 = vector.broadcast %3 : vector<16x1xf32> to vector<16x2xf32>
    %30 = arith.mulf %28, %29 : vector<16x2xf32>
    %cst_33 = arith.constant dense<0.000000e+00> : vector<32x2xf32>
    %31 = tpu.matmul %1, %30, %cst_33 {dimension_numbers = #tpu.dot_dimension_numbers<[1], [0], [0], [1], [0, 0, 1, 1], [], []>} : vector<32x16xf32>, vector<16x2xf32>, vector<32x2xf32> -> vector<32x2xf32>
    %32 = arith.subf %27, %31 : vector<32x2xf32>
    %33 = math.exp %32 : vector<32x2xf32>
    %cst_34 = arith.constant dense<0.000000e+00> : vector<16x2xf32>
    %34 = tpu.matmul %2, %33, %cst_34 {dimension_numbers = #tpu.dot_dimension_numbers<[1], [0], [0], [1], [0, 0, 1, 1], [], []>} : vector<16x32xf32>, vector<32x2xf32>, vector<16x2xf32> -> vector<16x2xf32>
    %cst_35 = arith.constant dense<0.000000e+00> : vector<32x2xf32>
    %35 = tpu.matmul %1, %34, %cst_35 {dimension_numbers = #tpu.dot_dimension_numbers<[1], [0], [0], [1], [0, 0, 1, 1], [], []>} : vector<32x16xf32>, vector<16x2xf32>, vector<32x2xf32> -> vector<32x2xf32>
    %cst_36 = arith.constant 9.99999968E-21 : f32
    %36 = vector.broadcast %cst_36 : f32 to vector<32x2xf32>
    %37 = arith.maximumf %35, %36 : vector<32x2xf32>
    %38 = arith.divf %33, %37 : vector<32x2xf32>
    %cst_37 = arith.constant dense<0.000000e+00> : vector<32x32xf32>
    %39 = tpu.matmul %38, %4, %cst_37 {dimension_numbers = #tpu.dot_dimension_numbers<[1], [0], [0], [1], [0, 0, 1, 1], [], []>} : vector<32x2xf32>, vector<2x32xf32>, vector<32x32xf32> -> vector<32x32xf32>
    %cst_38 = arith.constant dense<0.000000e+00> : vector<16x32xf32>
    %40 = tpu.matmul %5, %12, %cst_38 {dimension_numbers = #tpu.dot_dimension_numbers<[1], [0], [0], [1], [0, 0, 1, 1], [], []>} : vector<16x17xf32>, vector<17x32xf32>, vector<16x32xf32> -> vector<16x32xf32>
    %cst_39 = arith.constant dense<0.000000e+00> : vector<32x32xf32>
    %41 = tpu.matmul %0, %40, %cst_39 {dimension_numbers = #tpu.dot_dimension_numbers<[1], [0], [0], [1], [0, 0, 1, 1], [], []>} : vector<32x16xf32>, vector<16x32xf32>, vector<32x32xf32> -> vector<32x32xf32>
    %42 = arith.mulf %41, %39 : vector<32x32xf32>
    %cst_40 = arith.constant dense<0.000000e+00> : vector<16x32xf32>
    %43 = tpu.matmul %2, %42, %cst_40 {dimension_numbers = #tpu.dot_dimension_numbers<[1], [0], [0], [1], [0, 0, 1, 1], [], []>} : vector<16x32xf32>, vector<32x32xf32>, vector<16x32xf32> -> vector<16x32xf32>
    %c0_41 = arith.constant 0 : index
    %c0_42 = arith.constant 0 : index
    %44 = vector.load %arg19[%c0_41, %c0_42] : memref<32x32xf32, #tpu.memory_space<vmem>>, vector<32x32xf32>
    %c0_43 = arith.constant 0 : index
    %c0_44 = arith.constant 0 : index
    %45 = vector.load %arg20[%c0_43, %c0_44] : memref<32x32xf32, #tpu.memory_space<vmem>>, vector<32x32xf32>
    %c0_45 = arith.constant 0 : index
    %c0_46 = arith.constant 0 : index
    %46 = vector.load %arg21[%c0_45, %c0_46] : memref<32x32xf32, #tpu.memory_space<vmem>>, vector<32x32xf32>
    %c0_47 = arith.constant 0 : index
    %c0_48 = arith.constant 0 : index
    %47 = vector.load %arg22[%c0_47, %c0_48] : memref<1x32xf32, #tpu.memory_space<vmem>>, vector<1x32xf32>
    %c0_49 = arith.constant 0 : index
    %c0_50 = arith.constant 0 : index
    %48 = vector.load %arg23[%c0_49, %c0_50] : memref<32x2xf32, #tpu.memory_space<vmem>>, vector<32x2xf32>
    %c0_51 = arith.constant 0 : index
    %c0_52 = arith.constant 0 : index
    %49 = vector.load %arg24[%c0_51, %c0_52] : memref<32x32xf32, #tpu.memory_space<vmem>>, vector<32x32xf32>
    %cst_53 = arith.constant dense<0.000000e+00> : vector<16x32xf32>
    %50 = tpu.matmul %43, %44, %cst_53 {dimension_numbers = #tpu.dot_dimension_numbers<[1], [0], [0], [1], [0, 0, 1, 1], [], []>} : vector<16x32xf32>, vector<32x32xf32>, vector<16x32xf32> -> vector<16x32xf32>
    %cst_54 = arith.constant dense<0.000000e+00> : vector<32x32xf32>
    %51 = tpu.matmul %0, %50, %cst_54 {dimension_numbers = #tpu.dot_dimension_numbers<[1], [0], [0], [1], [0, 0, 1, 1], [], []>} : vector<32x16xf32>, vector<16x32xf32>, vector<32x32xf32> -> vector<32x32xf32>
    %cst_55 = arith.constant dense<0.000000e+00> : vector<16x32xf32>
    %52 = tpu.matmul %43, %45, %cst_55 {dimension_numbers = #tpu.dot_dimension_numbers<[1], [0], [0], [1], [0, 0, 1, 1], [], []>} : vector<16x32xf32>, vector<32x32xf32>, vector<16x32xf32> -> vector<16x32xf32>
    %cst_56 = arith.constant dense<0.000000e+00> : vector<32x32xf32>
    %53 = tpu.matmul %1, %52, %cst_56 {dimension_numbers = #tpu.dot_dimension_numbers<[1], [0], [0], [1], [0, 0, 1, 1], [], []>} : vector<32x16xf32>, vector<16x32xf32>, vector<32x32xf32> -> vector<32x32xf32>
    %54 = arith.addf %51, %53 : vector<32x32xf32>
    %cst_57 = arith.constant dense<0.000000e+00> : vector<32x32xf32>
    %55 = tpu.matmul %26, %46, %cst_57 {dimension_numbers = #tpu.dot_dimension_numbers<[1], [0], [0], [1], [0, 0, 1, 1], [], []>} : vector<32x32xf32>, vector<32x32xf32>, vector<32x32xf32> -> vector<32x32xf32>
    %56 = arith.addf %54, %55 : vector<32x32xf32>
    %57 = vector.broadcast %47 : vector<1x32xf32> to vector<32x32xf32>
    %58 = arith.addf %56, %57 : vector<32x32xf32>
    %cst_58 = arith.constant 0.000000e+00 : f32
    %59 = vector.broadcast %cst_58 : f32 to vector<32x32xf32>
    %60 = arith.cmpf ogt, %58, %59 : vector<32x32xf32>
    %cst_59 = arith.constant 2.000000e-01 : f32
    %61 = vector.broadcast %cst_59 : f32 to vector<32x32xf32>
    %62 = arith.mulf %61, %58 : vector<32x32xf32>
    %63 = arith.select %60, %58, %62 : vector<32x32xi1>, vector<32x32xf32>
    %cst_60 = arith.constant dense<0.000000e+00> : vector<32x2xf32>
    %64 = tpu.matmul %63, %48, %cst_60 {dimension_numbers = #tpu.dot_dimension_numbers<[1], [0], [0], [1], [0, 0, 1, 1], [], []>} : vector<32x32xf32>, vector<32x2xf32>, vector<32x2xf32> -> vector<32x2xf32>
    %cst_61 = arith.constant dense<0.000000e+00> : vector<16x2xf32>
    %65 = tpu.matmul %2, %64, %cst_61 {dimension_numbers = #tpu.dot_dimension_numbers<[1], [0], [0], [1], [0, 0, 1, 1], [], []>} : vector<16x32xf32>, vector<32x2xf32>, vector<16x2xf32> -> vector<16x2xf32>
    %66 = vector.broadcast %3 : vector<16x1xf32> to vector<16x2xf32>
    %67 = arith.mulf %65, %66 : vector<16x2xf32>
    %cst_62 = arith.constant dense<0.000000e+00> : vector<32x2xf32>
    %68 = tpu.matmul %1, %67, %cst_62 {dimension_numbers = #tpu.dot_dimension_numbers<[1], [0], [0], [1], [0, 0, 1, 1], [], []>} : vector<32x16xf32>, vector<16x2xf32>, vector<32x2xf32> -> vector<32x2xf32>
    %69 = arith.subf %64, %68 : vector<32x2xf32>
    %70 = math.exp %69 : vector<32x2xf32>
    %cst_63 = arith.constant dense<0.000000e+00> : vector<16x2xf32>
    %71 = tpu.matmul %2, %70, %cst_63 {dimension_numbers = #tpu.dot_dimension_numbers<[1], [0], [0], [1], [0, 0, 1, 1], [], []>} : vector<16x32xf32>, vector<32x2xf32>, vector<16x2xf32> -> vector<16x2xf32>
    %cst_64 = arith.constant dense<0.000000e+00> : vector<32x2xf32>
    %72 = tpu.matmul %1, %71, %cst_64 {dimension_numbers = #tpu.dot_dimension_numbers<[1], [0], [0], [1], [0, 0, 1, 1], [], []>} : vector<32x16xf32>, vector<16x2xf32>, vector<32x2xf32> -> vector<32x2xf32>
    %cst_65 = arith.constant 9.99999968E-21 : f32
    %73 = vector.broadcast %cst_65 : f32 to vector<32x2xf32>
    %74 = arith.maximumf %72, %73 : vector<32x2xf32>
    %75 = arith.divf %70, %74 : vector<32x2xf32>
    %cst_66 = arith.constant dense<0.000000e+00> : vector<32x32xf32>
    %76 = tpu.matmul %75, %4, %cst_66 {dimension_numbers = #tpu.dot_dimension_numbers<[1], [0], [0], [1], [0, 0, 1, 1], [], []>} : vector<32x2xf32>, vector<2x32xf32>, vector<32x32xf32> -> vector<32x32xf32>
    %cst_67 = arith.constant dense<0.000000e+00> : vector<16x32xf32>
    %77 = tpu.matmul %43, %49, %cst_67 {dimension_numbers = #tpu.dot_dimension_numbers<[1], [0], [0], [1], [0, 0, 1, 1], [], []>} : vector<16x32xf32>, vector<32x32xf32>, vector<16x32xf32> -> vector<16x32xf32>
    %cst_68 = arith.constant dense<0.000000e+00> : vector<32x32xf32>
    %78 = tpu.matmul %0, %77, %cst_68 {dimension_numbers = #tpu.dot_dimension_numbers<[1], [0], [0], [1], [0, 0, 1, 1], [], []>} : vector<32x16xf32>, vector<16x32xf32>, vector<32x32xf32> -> vector<32x32xf32>
    %79 = arith.mulf %78, %76 : vector<32x32xf32>
    %cst_69 = arith.constant dense<0.000000e+00> : vector<16x32xf32>
    %80 = tpu.matmul %2, %79, %cst_69 {dimension_numbers = #tpu.dot_dimension_numbers<[1], [0], [0], [1], [0, 0, 1, 1], [], []>} : vector<16x32xf32>, vector<32x32xf32>, vector<16x32xf32> -> vector<16x32xf32>
    %c0_70 = arith.constant 0 : index
    %c0_71 = arith.constant 0 : index
    %81 = vector.load %arg6[%c0_70, %c0_71] : memref<2x16xf32, #tpu.memory_space<vmem>>, vector<2x16xf32>
    %cst_72 = arith.constant dense<0.000000e+00> : vector<2x32xf32>
    %82 = tpu.matmul %81, %80, %cst_72 {dimension_numbers = #tpu.dot_dimension_numbers<[1], [0], [0], [1], [0, 0, 1, 1], [], []>} : vector<2x16xf32>, vector<16x32xf32>, vector<2x32xf32> -> vector<2x32xf32>
    %c0_73 = arith.constant 0 : index
    %c0_74 = arith.constant 0 : index
    %83 = vector.load %arg7[%c0_73, %c0_74] : memref<2x32xf32, #tpu.memory_space<vmem>>, vector<2x32xf32>
    %cst_75 = arith.constant dense<0.000000e+00> : vector<2x32xf32>
    %84 = tpu.matmul %83, %63, %cst_75 {dimension_numbers = #tpu.dot_dimension_numbers<[1], [0], [0], [1], [0, 0, 1, 1], [], []>} : vector<2x32xf32>, vector<32x32xf32>, vector<2x32xf32> -> vector<2x32xf32>
    %c0_76 = arith.constant 0 : index
    %c0_77 = arith.constant 0 : index
    %85 = vector.load %arg25[%c0_76, %c0_77] : memref<32x32xf32, #tpu.memory_space<vmem>>, vector<32x32xf32>
    %cst_78 = arith.constant dense<0.000000e+00> : vector<2x32xf32>
    %86 = tpu.matmul %82, %85, %cst_78 {dimension_numbers = #tpu.dot_dimension_numbers<[1], [0], [0], [1], [0, 0, 1, 1], [], []>} : vector<2x32xf32>, vector<32x32xf32>, vector<2x32xf32> -> vector<2x32xf32>
    %c0_79 = arith.constant 0 : index
    %c0_80 = arith.constant 0 : index
    %87 = vector.load %arg8[%c0_79, %c0_80] : memref<2x1xf32, #tpu.memory_space<vmem>>, vector<2x1xf32>
    %c0_81 = arith.constant 0 : index
    %c0_82 = arith.constant 0 : index
    %88 = vector.load %arg26[%c0_81, %c0_82] : memref<1x32xf32, #tpu.memory_space<vmem>>, vector<1x32xf32>
    %89 = vector.broadcast %87 : vector<2x1xf32> to vector<2x32xf32>
    %90 = vector.broadcast %88 : vector<1x32xf32> to vector<2x32xf32>
    %91 = arith.mulf %89, %90 : vector<2x32xf32>
    %92 = arith.addf %86, %91 : vector<2x32xf32>
    %c0_83 = arith.constant 0 : index
    %c0_84 = arith.constant 0 : index
    %93 = vector.load %arg27[%c0_83, %c0_84] : memref<32x32xf32, #tpu.memory_space<vmem>>, vector<32x32xf32>
    %cst_85 = arith.constant dense<0.000000e+00> : vector<2x32xf32>
    %94 = tpu.matmul %84, %93, %cst_85 {dimension_numbers = #tpu.dot_dimension_numbers<[1], [0], [0], [1], [0, 0, 1, 1], [], []>} : vector<2x32xf32>, vector<32x32xf32>, vector<2x32xf32> -> vector<2x32xf32>
    %c0_86 = arith.constant 0 : index
    %c0_87 = arith.constant 0 : index
    %95 = vector.load %arg9[%c0_86, %c0_87] : memref<2x1xf32, #tpu.memory_space<vmem>>, vector<2x1xf32>
    %c0_88 = arith.constant 0 : index
    %c0_89 = arith.constant 0 : index
    %96 = vector.load %arg28[%c0_88, %c0_89] : memref<1x32xf32, #tpu.memory_space<vmem>>, vector<1x32xf32>
    %97 = vector.broadcast %95 : vector<2x1xf32> to vector<2x32xf32>
    %98 = vector.broadcast %96 : vector<1x32xf32> to vector<2x32xf32>
    %99 = arith.mulf %97, %98 : vector<2x32xf32>
    %100 = arith.addf %94, %99 : vector<2x32xf32>
    %c0_90 = arith.constant 0 : index
    %c0_91 = arith.constant 0 : index
    %101 = vector.load %arg11[%c0_90, %c0_91] : memref<2x4xf32, #tpu.memory_space<vmem>>, vector<2x4xf32>
    %c0_92 = arith.constant 0 : index
    %c0_93 = arith.constant 0 : index
    %102 = vector.load %arg10[%c0_92, %c0_93] : memref<2x4xf32, #tpu.memory_space<vmem>>, vector<2x4xf32>
    %103 = arith.subf %101, %102 : vector<2x4xf32>
    %c0_94 = arith.constant 0 : index
    %c0_95 = arith.constant 0 : index
    %104 = vector.load %arg29[%c0_94, %c0_95] : memref<32x32xf32, #tpu.memory_space<vmem>>, vector<32x32xf32>
    %cst_96 = arith.constant dense<0.000000e+00> : vector<2x32xf32>
    %105 = tpu.matmul %92, %104, %cst_96 {dimension_numbers = #tpu.dot_dimension_numbers<[1], [0], [0], [1], [0, 0, 1, 1], [], []>} : vector<2x32xf32>, vector<32x32xf32>, vector<2x32xf32> -> vector<2x32xf32>
    %c0_97 = arith.constant 0 : index
    %c0_98 = arith.constant 0 : index
    %106 = vector.load %arg30[%c0_97, %c0_98] : memref<32x32xf32, #tpu.memory_space<vmem>>, vector<32x32xf32>
    %cst_99 = arith.constant dense<0.000000e+00> : vector<2x32xf32>
    %107 = tpu.matmul %100, %106, %cst_99 {dimension_numbers = #tpu.dot_dimension_numbers<[1], [0], [0], [1], [0, 0, 1, 1], [], []>} : vector<2x32xf32>, vector<32x32xf32>, vector<2x32xf32> -> vector<2x32xf32>
    %108 = arith.addf %105, %107 : vector<2x32xf32>
    %c0_100 = arith.constant 0 : index
    %c0_101 = arith.constant 0 : index
    %109 = vector.load %arg31[%c0_100, %c0_101] : memref<4x32xf32, #tpu.memory_space<vmem>>, vector<4x32xf32>
    %cst_102 = arith.constant dense<0.000000e+00> : vector<2x32xf32>
    %110 = tpu.matmul %103, %109, %cst_102 {dimension_numbers = #tpu.dot_dimension_numbers<[1], [0], [0], [1], [0, 0, 1, 1], [], []>} : vector<2x4xf32>, vector<4x32xf32>, vector<2x32xf32> -> vector<2x32xf32>
    %111 = arith.addf %108, %110 : vector<2x32xf32>
    %c0_103 = arith.constant 0 : index
    %c0_104 = arith.constant 0 : index
    %112 = vector.load %arg32[%c0_103, %c0_104] : memref<1x32xf32, #tpu.memory_space<vmem>>, vector<1x32xf32>
    %113 = vector.broadcast %112 : vector<1x32xf32> to vector<2x32xf32>
    %114 = arith.addf %111, %113 : vector<2x32xf32>
    %c0_105 = arith.constant 0 : index
    %c0_106 = arith.constant 0 : index
    %115 = vector.load %arg33[%c0_105, %c0_106] : memref<32x16xf32, #tpu.memory_space<vmem>>, vector<32x16xf32>
    %cst_107 = arith.constant dense<0.000000e+00> : vector<2x16xf32>
    %116 = tpu.matmul %114, %115, %cst_107 {dimension_numbers = #tpu.dot_dimension_numbers<[1], [0], [0], [1], [0, 0, 1, 1], [], []>} : vector<2x32xf32>, vector<32x16xf32>, vector<2x16xf32> -> vector<2x16xf32>
    %c0_108 = arith.constant 0 : index
    %c0_109 = arith.constant 0 : index
    %117 = vector.load %arg34[%c0_108, %c0_109] : memref<1x16xf32, #tpu.memory_space<vmem>>, vector<1x16xf32>
    %118 = vector.broadcast %117 : vector<1x16xf32> to vector<2x16xf32>
    %119 = arith.addf %116, %118 : vector<2x16xf32>
    %c0_110 = arith.constant 0 : index
    %c0_111 = arith.constant 0 : index
    %120 = vector.load %arg35[%c0_110, %c0_111] : memref<16x1xf32, #tpu.memory_space<vmem>>, vector<16x1xf32>
    %cst_112 = arith.constant dense<0.000000e+00> : vector<2x1xf32>
    %121 = tpu.matmul %119, %120, %cst_112 {dimension_numbers = #tpu.dot_dimension_numbers<[1], [0], [0], [1], [0, 0, 1, 1], [], []>} : vector<2x16xf32>, vector<16x1xf32>, vector<2x1xf32> -> vector<2x1xf32>
    %c0_113 = arith.constant 0 : index
    %c0_114 = arith.constant 0 : index
    %122 = vector.load %arg36[%c0_113, %c0_114] : memref<1x1xf32, #tpu.memory_space<vmem>>, vector<1x1xf32>
    %123 = vector.broadcast %122 : vector<1x1xf32> to vector<2x1xf32>
    %124 = arith.addf %121, %123 : vector<2x1xf32>
    %c0_115 = arith.constant 0 : index
    %c0_116 = arith.constant 0 : index
    %125 = vector.load %arg37[%c0_115, %c0_116] : memref<2x1xf32, #tpu.memory_space<vmem>>, vector<2x1xf32>
    tpu.vector_store %arg37[%c0_115, %c0_116], %124 {strides = array<i32>} : memref<2x1xf32, #tpu.memory_space<vmem>>, vector<2x1xf32>,
    return
  }
}

</mosaic_0001>

<bundles_post_ra>
// kernel: tpu_custom_call.1
= control target key start
LH: loop header
LB: loop body
LE: loop exit
PB: predicated region body
PF: predicated region fallthrough
CT: control target
= control target key end

     0   :  { %s2097_s6 = smov 1   ;;  %s2098_s10 = smov 2   ;;  %s2727_s0 = inlined_call_operand.smem [shape: u32[38], index: -1, kind: input, shape index: {}] }
   0x1   :  { %s2152_s5 = sld [smem:[%s2727_s0]]   ;;  %s2099_s14 = smov 3  }
   0x2   :  { %s2157_s9 = sld [smem:[%s2727_s0 + %s2097_s6]]   ;;  %s2100_s18 = smov 4  }
   0x3   :  { %s2162_s13 = sld [smem:[%s2727_s0 + %s2098_s10]]   ;;  %s2101_s22 = smov 5  }
   0x4   :  { %s2167_s17 = sld [smem:[%s2727_s0 + %s2099_s14]]   ;;  %s2102_s26 = smov 6  }
   0x5   :  { %s2172_s21 = sld [smem:[%s2727_s0 + %s2100_s18]]   ;;  %s2103_s30 = smov 7  }
   0x6   :  { %s2177_s25 = sld [smem:[%s2727_s0 + %s2101_s22]]   ;;  %s2104_s4 = smov 8  }
   0x7   :  { %s2182_s29 = sld [smem:[%s2727_s0 + %s2102_s26]]   ;;  %s2105_s10 = smov 9  }
   0x8   :  { %s2187_s3 = sld [smem:[%s2727_s0 + %s2103_s30]]   ;;  %s2106_s15 = smov 10  }
   0x9   :  { %s2192_s8 = sld [smem:[%s2727_s0 + %s2104_s4]]   ;;  %s2107_s20 = smov 11  }
   0xa   :  { %s2197_s14 = sld [smem:[%s2727_s0 + %s2105_s10]]   ;;  %s2108_s26 = smov 12  }
   0xb   :  { %s2202_s19 = sld [smem:[%s2727_s0 + %s2106_s15]]   ;;  %s2109_s1 = smov 13  }
   0xc   :  { %s2207_s24 = sld [smem:[%s2727_s0 + %s2107_s20]]   ;;  %s2110_s7 = smov 14  }
   0xd   :  { %2737 = sst [smem:[#allocation18_spill]] %s2182_s29  ;;  %s2111_s15 = smov 15  }
   0xe   :  { %2738 = sst [smem:[#allocation19_spill]] %s2187_s3  ;;  %s2112_s22 = smov 16  }
   0xf   :  { %2739 = sst [smem:[#allocation20_spill]] %s2192_s8  ;;  %s2113_s28 = smov 17  }
  0x10   :  { %2740 = sst [smem:[#allocation21_spill]] %s2197_s14 }
  0x11   :  { %2741 = sst [smem:[#allocation22_spill]] %s2202_s19 }
  0x12   :  { %2742 = sst [smem:[#allocation23_spill]] %s2207_s24 }
  0x13   :  { %s2212_s30 = sld [smem:[%s2727_s0 + %s2108_s26]]  }
  0x14   :  { %s2217_s6 = sld [smem:[%s2727_s0 + %s2109_s1]]   ;;  %s2133_s1 = smov 37  }
  0x15   :  { %s2222_s12 = sld [smem:[%s2727_s0 + %s2110_s7]]   ;;  %s2114_s7 = smov 18  }
  0x16   :  { %s2227_s20 = sld [smem:[%s2727_s0 + %s2111_s15]]   ;;  %s2115_s15 = smov 19  }
  0x17   :  { %s2232_s27 = sld [smem:[%s2727_s0 + %s2112_s22]]   ;;  %s2116_s22 = smov 20  }
  0x18   :  { %s2237_s4 = sld [smem:[%s2727_s0 + %s2113_s28]]   ;;  %s2117_s28 = smov 21  }
  0x19   :  { %s2242_s19 = sld [smem:[%s2727_s0 + %s2114_s7]]   ;;  %s2118_s7 = smov 22  }
  0x1a   :  { %s2247_s24 = sld [smem:[%s2727_s0 + %s2115_s15]]   ;;  %s2119_s15 = smov 23  }
  0x1b   :  { %s2252_s14 = sld [smem:[%s2727_s0 + %s2116_s22]]   ;;  %s2120_s22 = smov 24  }
  0x1c   :  { %s2257_s8 = sld [smem:[%s2727_s0 + %s2117_s28]]   ;;  %s2121_s28 = smov 25  }
  0x1d   :  { %s2262_s3 = sld [smem:[%s2727_s0 + %s2118_s7]]   ;;  %s2122_s7 = smov 26  }
  0x1e   :  { %s2267_s29 = sld [smem:[%s2727_s0 + %s2119_s15]]   ;;  %s2123_s15 = smov 27  }
  0x20   :  { %2743 = sst [smem:[#allocation24_spill]] %s2247_s24 }
  0x21   :  { %2744 = sst [smem:[#allocation25_spill]] %s2252_s14 }
  0x22   :  { %2745 = sst [smem:[#allocation26_spill]] %s2257_s8 }
  0x23   :  { %2746 = sst [smem:[#allocation27_spill]] %s2262_s3 }
  0x24   :  { %2747 = sst [smem:[#allocation28_spill]] %s2267_s29 }
  0x25   :  { %s2272_s14 = sld [smem:[%s2727_s0 + %s2120_s22]]   ;;  %s2124_s22 = smov 28  }
  0x26   :  { %s2277_s8 = sld [smem:[%s2727_s0 + %s2121_s28]]   ;;  %s2125_s28 = smov 29  }
  0x27   :  { %s2282_s3 = sld [smem:[%s2727_s0 + %s2122_s7]]   ;;  %s2126_s7 = smov 30  }
  0x28   :  { %s2287_s29 = sld [smem:[%s2727_s0 + %s2123_s15]]   ;;  %s2127_s15 = smov 31  }
  0x2b   :  { %2748 = sst [smem:[#allocation29_spill]] %s2272_s14 }
  0x2c   :  { %2749 = sst [smem:[#allocation30_spill]] %s2277_s8 }
  0x2d   :  { %2750 = sst [smem:[#allocation31_spill]] %s2282_s3 }
  0x2e   :  { %2751 = sst [smem:[#allocation32_spill]] %s2287_s29 }
  0x2f   :  { %s2292_s14 = sld [smem:[%s2727_s0 + %s2124_s22]]   ;;  %s2128_s22 = smov 32  }
  0x30   :  { %s2297_s8 = sld [smem:[%s2727_s0 + %s2125_s28]]   ;;  %s2129_s28 = smov 33  }
  0x31   :  { %s2302_s3 = sld [smem:[%s2727_s0 + %s2126_s7]]   ;;  %s2130_s7 = smov 34  }
  0x32   :  { %s2307_s29 = sld [smem:[%s2727_s0 + %s2127_s15]]   ;;  %s2131_s15 = smov 35  }
  0x33   :  { %s2322_s24 = sld [smem:[%s2727_s0 + %s2130_s7]]  }
  0x35   :  { %2752 = sst [smem:[#allocation33_spill]] %s2292_s14 }
  0x36   :  { %2753 = sst [smem:[#allocation34_spill]] %s2297_s8 }
  0x37   :  { %s2312_s14 = sld [smem:[%s2727_s0 + %s2128_s22]]   ;;  %s2132_s22 = smov 36  }
  0x38   :  { %2754 = sst [smem:[#allocation35_spill]] %s2307_s29 }
  0x39   :  { %s2317_s8 = sld [smem:[%s2727_s0 + %s2129_s28]]  }
  0x3a   :  { %s2327_s29 = sld [smem:[%s2727_s0 + %s2131_s15]]  }
  0x3d   :  { %2755 = sst [smem:[#allocation36_spill]] %s2312_s14 }
  0x3e   :  { %s1727_s14 = sld [smem:[%s2727_s0 + %s2132_s22]]  }
  0x3f   :  { %2756 = sst [smem:[#allocation37_spill]] %s2317_s8 }
  0x40   :  { %s2335_s8 = sld [smem:[%s2727_s0 + %s2133_s1]]  }
  0x44   :  { %v80_v0 = vstv %s1727_s14 }
  0x45   :  { %81 = vst [vmem:[#allocation2] sm:$0x1] %v80_v0 }
  0x46   :  { %82 = vsyncpa [#allocation4], 0 }
  0x47   :  { %83 = vsyncpa [#allocation6], 0 }
  0x48   :  { %84 = vsyncpa [#allocation9], 0 }
  0x49   :  { %85 = vsyncpa [#allocation12], 0  ;;  %s109_s7 = sshll.u32 %s2172_s21, 4  ;;  %s2134_s10 = smov [#allocation5]   ;;  %s110_s7 = int_to_ptr.hbm [resolvable:$true] %s109_s7 }
  0x4a   :  { %s111_s11 = sshll.u32 %s2134_s10, 4  ;;  %s151_s15 = sshll.u32 %s2222_s12, 4  ;;  %s112_s11 = int_to_ptr.vmem [resolvable:$true] %s111_s11  ;;  %s152_s15 = int_to_ptr.hbm [resolvable:$true] %s151_s15 }
  0x4b   :  { %s1921_s16 = sshra.s32 %s110_s7, 4  ;;  %s1925_s14 = scalar_lea.hbm %s2172_s21, 16  ;;  %s1922_s16 = int_to_ptr.hbm [resolvable:$true] %s1921_s16 }
  0x4c   :  { %s1923_s0 = scalar_lea.hbm %s1922_s16, 16  ;;  %p1926_p1 = scmp.lt.s32.totalorder %s1922_s16, %s2172_s21 }
  0x4d   :  { %p1924_p0 = scmp.ne.s32.totalorder %s1922_s16, %s1923_s0  ;;  %p1927_p2 = scmp.lt.s32.totalorder %s1925_s14, %s1923_s0 }
  0x4f   :  { %p1928_p3 = por %p1927_p2, %p1926_p1 }
  0x51   :  { %p1929_p4 = pnand %p1928_p3, %p1924_p0 }
  0x53   :  { %1932 = shalt.err (!%p1929_p4)
}
  0x54   :  { %s2135_s18 = smov 128   ;;  %s2136_s22 = smov 8  }
  0x55   :  { %117 = dma.hbm_to_vmem [thread:$0]  %s110_s7, 256, %s112_s11, [#allocation6], %s2135_s18, %s2135_s18, %s2136_s22  }
  0x56   :  { %s2137_s23 = smov [#allocation8]   ;;  %s181_s1 = sshll.u32 %s2242_s19, 4  ;;  %s2345_s1 = int_to_ptr.hbm [resolvable:$true] %s181_s1 }
  0x57   :  { %s153_s26 = sshll.u32 %s2137_s23, 4  ;;  %s1945_s21 = sshra.s32 %s152_s15, 4  ;;  %s154_s26 = int_to_ptr.vmem [resolvable:$true] %s153_s26  ;;  %s1946_s21 = int_to_ptr.hbm [resolvable:$true] %s1945_s21 }
  0x58   :  { %s1947_s28 = scalar_lea.hbm %s1946_s21, 24  ;;  %s1949_s2 = scalar_lea.hbm %s2222_s12, 24 }
  0x59   :  { %p1948_p5 = scmp.ne.s32.totalorder %s1946_s21, %s1947_s28  ;;  %p1950_p6 = scmp.lt.s32.totalorder %s1946_s21, %s2222_s12 }
  0x5a   :  { %p1951_p7 = scmp.lt.s32.totalorder %s1949_s2, %s1947_s28 }
  0x5c   :  { %p1952_p8 = por %p1951_p7, %p1950_p6 }
  0x5e   :  { %p1953_p9 = pnand %p1952_p8, %p1948_p5 }
  0x60   :  { %1956 = shalt.err (!%p1953_p9)
}
  0x61   :  { %159 = dma.hbm_to_vmem [thread:$0]  %s152_s15, 384, %s154_s26, [#allocation9], %s2135_s18, %s2135_s18, %s2136_s22  }
  0x62   :  { %s90_s7 = sshll.u32 %s2152_s5, 4  ;;  %s2138_s10 = smov [#allocation11]   ;;  %s2353_s7 = int_to_ptr.hbm [resolvable:$true] %s90_s7 }
  0x63   :  { %s183_s11 = sshll.u32 %s2138_s10, 4  ;;  %s1969_s16 = sshra.s32 %s2345_s1, 4  ;;  %s184_s11 = int_to_ptr.vmem [resolvable:$true] %s183_s11  ;;  %s1970_s16 = int_to_ptr.hbm [resolvable:$true] %s1969_s16 }
  0x64   :  { %s1971_s12 = scalar_lea.hbm %s1970_s16, 24  ;;  %s1973_s0 = scalar_lea.hbm %s2242_s19, 24 }
  0x65   :  { %p1972_p10 = scmp.ne.s32.totalorder %s1970_s16, %s1971_s12  ;;  %p1974_p11 = scmp.lt.s32.totalorder %s1970_s16, %s2242_s19 }
  0x66   :  { %p1975_p12 = scmp.lt.s32.totalorder %s1973_s0, %s1971_s12 }
  0x68   :  { %p1976_p13 = por %p1975_p12, %p1974_p11 }
  0x6a   :  { %p1977_p0 = pnand %p1976_p13, %p1972_p10 }
  0x6c   :  { %1980 = shalt.err (!%p1977_p0)
}
  0x6d   :  { %189 = dma.hbm_to_vmem [thread:$0]  %s2345_s1, 384, %s184_s11, [#allocation12], %s2135_s18, %s2135_s18, %s2136_s22  }
  0x6e   :  { %s2139_s15 = smov [#allocation3]   ;;  %s138_s23 = sshll.u32 %s2217_s6, 4  ;;  %s2363_s23 = int_to_ptr.hbm [resolvable:$true] %s138_s23 }
  0x6f   :  { %s92_s14 = sshll.u32 %s2139_s15, 4  ;;  %s1993_s19 = sshra.s32 %s2353_s7, 4  ;;  %s93_s14 = int_to_ptr.vmem [resolvable:$true] %s92_s14  ;;  %s1994_s19 = int_to_ptr.hbm [resolvable:$true] %s1993_s19 }
  0x70   :  { %s1995_s26 = scalar_lea.hbm %s1994_s19, 16  ;;  %s1997_s21 = scalar_lea.hbm %s2152_s5, 16 }
  0x71   :  { %p1996_p1 = scmp.ne.s32.totalorder %s1994_s19, %s1995_s26  ;;  %p1998_p2 = scmp.lt.s32.totalorder %s1994_s19, %s2152_s5 }
  0x72   :  { %p1999_p3 = scmp.lt.s32.totalorder %s1997_s21, %s1995_s26 }
  0x74   :  { %p2000_p4 = por %p1999_p3, %p1998_p2 }
  0x76   :  { %p2001_p5 = pnand %p2000_p4, %p1996_p1 }
  0x78   :  { %2004 = shalt.err (!%p2001_p5)
}
  0x79   :  { %98 = dma.hbm_to_vmem [thread:$0]  %s2353_s7, 256, %s93_s14, [#allocation4], %s2135_s18, %s2135_s18, %s2136_s22  }
  0x7a   :  { %s164_s1 = sshll.u32 %s2227_s20, 4  ;;  %s2140_s28 = smov [#allocation7]   ;;  %s2373_s1 = int_to_ptr.hbm [resolvable:$true] %s164_s1 }
  0x7b   :  { %s140_s2 = sshll.u32 %s2140_s28, 4  ;;  %s2017_s5 = sshra.s32 %s2363_s23, 4  ;;  %s141_s2 = int_to_ptr.vmem [resolvable:$true] %s140_s2  ;;  %s2018_s5 = int_to_ptr.hbm [resolvable:$true] %s2017_s5 }
  0x7c   :  { %s2019_s10 = scalar_lea.hbm %s2018_s5, 24  ;;  %s2021_s11 = scalar_lea.hbm %s2217_s6, 24 }
  0x7d   :  { %p2020_p6 = scmp.ne.s32.totalorder %s2018_s5, %s2019_s10  ;;  %p2022_p7 = scmp.lt.s32.totalorder %s2018_s5, %s2217_s6 }
  0x7e   :  { %p2023_p8 = scmp.lt.s32.totalorder %s2021_s11, %s2019_s10 }
  0x80   :  { %p2024_p9 = por %p2023_p8, %p2022_p7 }
  0x82   :  { %p2025_p10 = pnand %p2024_p9, %p2020_p6 }
  0x84   :  { %2028 = shalt.err (!%p2025_p10)
}
  0x85   :  { %146 = dma.hbm_to_vmem [thread:$0]  %s2363_s23, 384, %s141_s2, [#allocation6], %s2135_s18, %s2135_s18, %s2136_s22  }
  0x86   :  { %s2141_s7 = smov [#allocation10]   ;;  %s216_s12 = sshll.u32 %s2302_s3, 4  ;;  %s217_s12 = int_to_ptr.hbm [resolvable:$true] %s216_s12 }
  0x87   :  { %s166_s16 = sshll.u32 %s2141_s7, 4  ;;  %s2041_s0 = sshra.s32 %s2373_s1, 4  ;;  %s167_s16 = int_to_ptr.vmem [resolvable:$true] %s166_s16  ;;  %s2042_s0 = int_to_ptr.hbm [resolvable:$true] %s2041_s0 }
  0x88   :  { %s2043_s6 = scalar_lea.hbm %s2042_s0, 16  ;;  %s2045_s15 = scalar_lea.hbm %s2227_s20, 16 }
  0x89   :  { %p2044_p11 = scmp.ne.s32.totalorder %s2042_s0, %s2043_s6  ;;  %p2046_p12 = scmp.lt.s32.totalorder %s2042_s0, %s2227_s20 }
  0x8a   :  { %p2047_p13 = scmp.lt.s32.totalorder %s2045_s15, %s2043_s6 }
  0x8c   :  { %p2048_p0 = por %p2047_p13, %p2046_p12 }
  0x8e   :  { %p2049_p1 = pnand %p2048_p0, %p2044_p11 }
  0x90   :  { %2052 = shalt.err (!%p2049_p1)
}
  0x91   :  { %172 = dma.hbm_to_vmem [thread:$0]  %s2373_s1, 256, %s167_s16, [#allocation9], %s2135_s18, %s2135_s18, %s2136_s22  }
  0x92   :  { %s2142_s14 = smov [#allocation13]   ;;  %s2065_s19 = sshra.s32 %s217_s12, 4  ;;  %s2066_s19 = int_to_ptr.hbm [resolvable:$true] %s2065_s19 }
  0x93   :  { %s218_s23 = sshll.u32 %s2142_s14, 4  ;;  %s2067_s26 = scalar_lea.hbm %s2066_s19, 32  ;;  %s219_s23 = int_to_ptr.vmem [resolvable:$true] %s218_s23 }
  0x94   :  { %p2068_p2 = scmp.ne.s32.totalorder %s2066_s19, %s2067_s26  ;;  %s2069_s20 = scalar_lea.hbm %s2302_s3, 32 }
  0x95   :  { %p2070_p3 = scmp.lt.s32.totalorder %s2066_s19, %s2302_s3  ;;  %p2071_p4 = scmp.lt.s32.totalorder %s2069_s20, %s2067_s26 }
  0x97   :  { %p2072_p5 = por %p2071_p4, %p2070_p3 }
  0x99   :  { %p2073_p6 = pnand %p2072_p5, %p2068_p2 }
  0x9b   :  { %2076 = shalt.err (!%p2073_p6)
}
  0x9c   :  { %224 = dma.hbm_to_vmem [thread:$0]  %s217_s12, 512, %s219_s23, [#allocation12], %s2135_s18, %s2135_s18, %s2136_s22  }
  0x9d   :  { %2089 = dma.done.wait [#allocation4], 256  }
  0x9e   :  { %2090 = vsyncadd [#allocation4], 4294967040 }
  0x9f   :  { %2091 = dma.done.wait [#allocation6], 640  }
  0xa0   :  { %2092 = vsyncadd [#allocation6], 4294966656 }
  0xa1   :  { %2093 = dma.done.wait [#allocation9], 640  }
  0xa2   :  { %2094 = vsyncadd [#allocation9], 4294966656 }
  0xa3   :  { %2095 = dma.done.wait [#allocation12], 896  }
  0xa4   :  { %2096 = vsyncadd [#allocation12], 4294966400  ;;  %vm307_vm0 = vcmask 1040384   ;;  %v286_v1 = vld [vmem:[#allocation7 + $0x10] sm:$0x1]  ;;  %v285_v3 = vld [vmem:[#allocation7 + $0x8] sm:$0xff] }
  0xa5   :  { %v289_v2 = vld [vmem:[#allocation8 + $0x10] sm:$0x1]  ;;  %1729 = vmatpush.msk.msra.mxu0 %vm307_vm0, %v286_v1  ;;  %v288_v4 = vld [vmem:[#allocation8 + $0x8] sm:$0xff]  ;;  %v287_v6 = vld [vmem:[#allocation8] sm:$0xff]  ;;  %vm300_vm1 = vcmask 138240   ;;  %vm456_vm2 = vcmask 1046528  }
  0xa6   :  { %1732 = vmatpush.msk.msra.mxu1 %vm307_vm0, %v289_v2  ;;  %v284_v5 = vld [vmem:[#allocation7] sm:$0xff]  ;;  %v2403_v8 = vld [vmem:[#allocation3 + $0x8] sm:$0xff]  ;;  %v291_v9 = vld [vmem:[#allocation10 + $0x8] sm:$0x7f]  ;;  %vm443_vm3 = vcmask 121856   ;;  %vm360_vm4 = vcmask 130048  }
  0xa7   :  { %v2397_v7 = vld [vmem:[#allocation3] sm:$0xff]  ;;  %325 = vmatpush.msra.mxu0 %v285_v3  ;;  %v290_v10 = vld [vmem:[#allocation10] sm:$0xff]  ;;  %v1882_v35 = vld [vmem:[%s2232_s27] ss:$0 sm:$0xff]  ;;  %vm512_vm6 = vcmask 261120   ;;  %v2143_v1 = vmov 0  }
  0xa8   :  { %351 = vmatpush.msra.mxu1 %v288_v4  ;;  %v280_v11 = vld [vmem:[%s2157_s9] sm:$0xff]  ;;  %v281_v12 = vld [vmem:[%s2157_s9 + $0x8] sm:$0xff]  ;;  %v282_v15 = vld [vmem:[%s2157_s9 + $0x10] sm:$0xff]  ;;  %1880 = vset.pattern.permute.xlu0 %v2143_v1  ;;  %vm765_vm10 = vcmask 1041408   ;;  %vm752_vm15 = vcmask 15360   ;;  %s2761_s3 = sld [smem:[#allocation27_spill]] }
  0xa9   :  { %326 = vmatpush.msra.mxu0 %v284_v5  ;;  %v2416_v18 = vld [vmem:[%s2167_s17] sm:$0xff]  ;;  %v283_v20 = vld [vmem:[%s2157_s9 + $0x18] sm:$0xff]  ;;  %v2428_v21 = vld [vmem:[%s2167_s17 + $0x8] sm:$0xff]  ;;  %1881 = vset.pattern.permute.xlu1 %v2143_v1  ;;  %s2757_s9 = sld [smem:[#allocation24_spill]] }
  0xaa   :  { %352 = vmatpush.msra.mxu1 %v287_v6  ;;  %1730 = vmatmul.msk.f32.vlgmr.msra.gmra.mxu0 %vm300_vm1, %v2397_v7  ;;  %v2419_v19 = vld [vmem:[%s2162_s13] sm:$0xff]  ;;  %v2431_v22 = vld [vmem:[%s2162_s13 + $0x8] sm:$0xff]  ;;  %v2438_v23 = vld [vmem:[%s2167_s17 + $0x10] sm:$0xff]  ;;  %s2763_s27 = sld [smem:[#allocation30_spill]] }
  0xab   :  { %1733 = vmatmul.msk.f32.vlgmr.msra.gmra.mxu1 %vm300_vm1, %v2397_v7  ;;  %1743 = vmatpush.msk.msrb.mxu0 %vm456_vm2, %v291_v9  ;;  %v2441_v24 = vld [vmem:[%s2162_s13 + $0x10] sm:$0xff]  ;;  %v2448_v25 = vld [vmem:[%s2167_s17 + $0x18] sm:$0xff]  ;;  %v294_v29 = vld [vmem:[%s2237_s4 + $0x8] sm:$0xff]  ;;  %s2759_s17 = sld [smem:[#allocation26_spill]] }
  0xac   :  { %v2451_v26 = vld [vmem:[%s2162_s13 + $0x18] sm:$0xff]  ;;  %v295_v28 = vld [vmem:[%s2237_s4 + $0x10] sm:$0xff]  ;;  %v293_v30 = vld [vmem:[%s2237_s4] sm:$0xff]  ;;  %s2758_s13 = sld [smem:[#allocation25_spill]] }
  0xad   :  { %475 = vmatpush.msrb.mxu0 %v290_v10  ;;  %v296_v27 = vld [vmem:[%s2237_s4 + $0x18] sm:$0xff]  ;;  %v276_v3 = vld [vmem:[%s2177_s25 + $0x8] sm:$0xff]  ;;  %v275_v4 = vld [vmem:[%s2177_s25] sm:$0xff]  ;;  %s2760_s25 = sld [smem:[#allocation28_spill]] }
  0xae   :  { %537 = vmatpush.msrb.mxu1 %v296_v27  ;;  %590 = vperm.xlu0 %1880, %v276_v3   ;;  %v2480_v9 = vld [vmem:[#allocation5] sm:$0xff]  ;;  %v2484_v10 = vld [vmem:[#allocation5 + $0x8] sm:$0xff]  ;;  %s2764_s4 = sld [smem:[#allocation18_spill]] }
  0xaf   :  { %s2765_s18 = sld [smem:[#allocation19_spill]] }
  0xb0   :  { %538 = vmatpush.msrb.mxu1 %v295_v28  ;;  %s2766_s22 = sld [smem:[#allocation32_spill]] }
  0xb1   :  { %s2767_s21 = sld [smem:[#allocation20_spill]] }
  0xb2   :  { %1731 = vmatmul.msk.f32.gmra.mxu0 %vm300_vm1, %v2403_v8  ;;  %539 = vmatpush.msrb.mxu1 %v294_v29  ;;  %s2768_s1 = sld [smem:[#allocation21_spill]] }
  0xb3   :  { %1734 = vmatmul.msk.f32.gmra.mxu1 %vm300_vm1, %v2403_v8  ;;  %s2769_s28 = sld [smem:[#allocation34_spill]] }
  0xb4   :  { %540 = vmatpush.msrb.mxu1 %v293_v30  ;;  %s2770_s2 = sld [smem:[#allocation35_spill]] }
  0xb5   :  { %s2771_s5 = sld [smem:[#allocation23_spill]] }
  0xb6   :  { %585 = vperm.xlu0 %1880, %v275_v4   ;;  %s2772_s10 = sld [smem:[#allocation22_spill]] }
  0xb7   :  { %s2773_s11 = sld [smem:[#allocation31_spill]] }
  0xb8   :  { %s2774_s7 = sld [smem:[#allocation33_spill]] }
  0xb9   :  { %s2775_s16 = sld [smem:[#allocation37_spill]] }
  0xba   :  { %1744 = vmatmul.msk.f32.vlgmr.msrb.gmra.mxu0 %vm443_vm3, %v280_v11  ;;  %s2776_s12 = sld [smem:[#allocation36_spill]] }
  0xc2   :  { %1745 = vmatmul.msk.f32.gmra.mxu0 %vm443_vm3, %v281_v12 }
  0xca   :  { %1746 = vmatmul.msk.f32.gmra.mxu0 %vm443_vm3, %v282_v15 }
  0xd2   :  { %1747 = vmatmul.msk.f32.gmra.mxu0 %vm443_vm3, %v283_v20 }
 0x120   :  { %v2488_v11 = vpop.permute.xlu0 %590 }
 0x127   :  { %v328_v13 = vpop.f32.mrf.mxu0 }
 0x128   :  { %v354_v14 = vpop.f32.mrf.mxu1 }
 0x12f   :  { %v331_v16 = vpop.f32.mrf.mxu0 }
 0x130   :  { %v357_v17 = vpop.f32.mrf.mxu1  ;;  %428 = vmatpush.msra.mxu3 %v331_v16 }
 0x131   :  { %387 = vmatpush.msra.mxu2 %v357_v17 }
 0x132   :  { %429 = vmatpush.msra.mxu3 %v328_v13  ;;  %v2490_v13 = vpop.permute.xlu0 %585 }
 0x133   :  { %388 = vmatpush.msra.mxu2 %v354_v14  ;;  %1739 = vmatmul.msk.f32.vlgmr.msra.gmra.mxu3 %vm360_vm4, %v2419_v19 }
 0x134   :  { %1735 = vmatmul.msk.f32.vlgmr.msra.gmra.mxu2 %vm360_vm4, %v2416_v18 }
 0x137   :  { %v477_v31 = vpop.f32.mrf.mxu0 }
 0x13b   :  { %1740 = vmatmul.msk.f32.gmra.mxu3 %vm360_vm4, %v2431_v22 }
 0x13c   :  { %1736 = vmatmul.msk.f32.gmra.mxu2 %vm360_vm4, %v2428_v21 }
 0x13f   :  { %v480_v37 = vpop.f32.mrf.mxu0 }
 0x143   :  { %1741 = vmatmul.msk.f32.gmra.mxu3 %vm360_vm4, %v2441_v24 }
 0x144   :  { %1737 = vmatmul.msk.f32.gmra.mxu2 %vm360_vm4, %v2438_v23 }
 0x147   :  { %v483_v46 = vpop.f32.mrf.mxu0 }
 0x14b   :  { %1742 = vmatmul.msk.f32.gmra.mxu3 %vm360_vm4, %v2451_v26 }
 0x14c   :  { %1738 = vmatmul.msk.f32.gmra.mxu2 %vm360_vm4, %v2448_v25 }
 0x14f   :  { %v486_v54 = vpop.f32.mrf.mxu0 }
 0x1b6   :  { %v431_v33 = vpop.f32.mrf.mxu3 }
 0x1b7   :  { %v390_v32 = vpop.f32.mrf.mxu2 }
 0x1b8   :  { %v432_v34 = vadd.f32 %v431_v33, %v390_v32 }
 0x1ba   :  { %v489_v36 = vadd.f32 %v477_v31, %v432_v34 }
 0x1bc   :  { %v496_v38 = vadd.f32 %v1882_v35, %v489_v36 }
 0x1be   :  { %v504_v39 = vmul.f32 0.2, %v496_v38  ;;  %vm500_vm5 = vcmp.gt.f32.partialorder %v496_v38, 0.0  ;;  %v434_v41 = vpop.f32.mrf.mxu3 }
 0x1bf   :  { %v393_v40 = vpop.f32.mrf.mxu2 }
 0x1c0   :  { %v435_v42 = vadd.f32 %v434_v41, %v393_v40  ;;  %v2462_v43 = vsel %vm500_vm5, %v496_v38, %v504_v39  ;;  %v299_v41 = vld [vmem:[#allocation11 + $0x10] sm:$0x1] }
 0x1c1   :  { %1748 = vmatmul.msk.f32.vlgmr.msrb.gmra.mxu1 %vm512_vm6, %v2462_v43 }
 0x1c2   :  { %v490_v44 = vadd.f32 %v480_v37, %v435_v42  ;;  %v298_v42 = vld [vmem:[#allocation11 + $0x8] sm:$0xff] }
 0x1c4   :  { %v497_v45 = vadd.f32 %v1882_v35, %v490_v44  ;;  %v297_v44 = vld [vmem:[#allocation11] sm:$0xff] }
 0x1c6   :  { %vm501_vm7 = vcmp.gt.f32.partialorder %v497_v45, 0.0  ;;  %v505_v47 = vmul.f32 0.2, %v497_v45  ;;  %v437_v49 = vpop.f32.mrf.mxu3 }
 0x1c7   :  { %v396_v48 = vpop.f32.mrf.mxu2 }
 0x1c8   :  { %v438_v50 = vadd.f32 %v437_v49, %v396_v48  ;;  %v2466_v51 = vsel %vm501_vm7, %v497_v45, %v505_v47 }
 0x1c9   :  { %1749 = vmatmul.msk.f32.gmra.mxu1 %vm512_vm6, %v2466_v51 }
 0x1ca   :  { %v491_v52 = vadd.f32 %v483_v46, %v438_v50 }
 0x1cc   :  { %v498_v53 = vadd.f32 %v1882_v35, %v491_v52 }
 0x1ce   :  { %vm502_vm8 = vcmp.gt.f32.partialorder %v498_v53, 0.0  ;;  %v506_v55 = vmul.f32 0.2, %v498_v53  ;;  %v440_v57 = vpop.f32.mrf.mxu3 }
 0x1cf   :  { %v399_v56 = vpop.f32.mrf.mxu2 }
 0x1d0   :  { %v441_v58 = vadd.f32 %v440_v57, %v399_v56  ;;  %v2470_v59 = vsel %vm502_vm8, %v498_v53, %v506_v55 }
 0x1d1   :  { %1750 = vmatmul.msk.f32.gmra.mxu1 %vm512_vm6, %v2470_v59 }
 0x1d2   :  { %v492_v60 = vadd.f32 %v486_v54, %v441_v58 }
 0x1d4   :  { %v499_v61 = vadd.f32 %v1882_v35, %v492_v60 }
 0x1d6   :  { %vm503_vm9 = vcmp.gt.f32.partialorder %v499_v61, 0.0  ;;  %v507_v62 = vmul.f32 0.2, %v499_v61 }
 0x1d8   :  { %v2474_v63 = vsel %vm503_vm9, %v499_v61, %v507_v62 }
 0x1d9   :  { %1751 = vmatmul.msk.f32.gmra.mxu1 %vm512_vm6, %v2474_v63 }
 0x23e   :  { %v542_v0 = vpop.f32.mrf.mxu1 }
 0x246   :  { %v545_v2 = vpop.f32.mrf.mxu1 }
 0x24e   :  { %v548_v5 = vpop.f32.mrf.mxu1 }
 0x256   :  { %v551_v6 = vpop.f32.mrf.mxu1 }
 0x257   :  { %572 = vmatpush.msrb.mxu2 %v551_v6 }
 0x259   :  { %573 = vmatpush.msrb.mxu2 %v548_v5 }
 0x25b   :  { %574 = vmatpush.msrb.mxu2 %v545_v2 }
 0x25d   :  { %575 = vmatpush.msrb.mxu2 %v542_v0 }
 0x25e   :  { %1752 = vmatmul.msk.f32.vlgmr.msrb.gmra.mxu2 %vm512_vm6, %v2480_v9 }
 0x266   :  { %1753 = vmatmul.msk.f32.gmra.mxu2 %vm512_vm6, %v2484_v10 }
 0x2e1   :  { %v577_v12 = vpop.f32.mrf.mxu2 }
 0x2e2   :  { %v593_v16 = vmul.f32 %v2490_v13, %v577_v12 }
 0x2e9   :  { %v580_v14 = vpop.f32.mrf.mxu2 }
 0x2ea   :  { %v594_v15 = vmul.f32 %v2488_v11, %v580_v14 }
 0x2ec   :  { %609 = vmatpush.msrb.mxu3 %v594_v15 }
 0x2ee   :  { %610 = vmatpush.msrb.mxu3 %v593_v16 }
 0x2ef   :  { %1754 = vmatmul.msk.f32.vlgmr.msrb.gmra.mxu3 %vm360_vm4, %v2416_v18 }
 0x2f7   :  { %1755 = vmatmul.msk.f32.gmra.mxu3 %vm360_vm4, %v2428_v21 }
 0x2ff   :  { %1756 = vmatmul.msk.f32.gmra.mxu3 %vm360_vm4, %v2438_v23 }
 0x307   :  { %1757 = vmatmul.msk.f32.gmra.mxu3 %vm360_vm4, %v2448_v25 }
 0x372   :  { %v612_v17 = vpop.f32.mrf.mxu3 }
 0x373   :  { %v624_v32 = vsub.f32 %v542_v0, %v612_v17 }
 0x375   :  { %v628_v36 = vmul.f32 1.442695, %v624_v32 }
 0x37a   :  { %v615_v20 = vpop.f32.mrf.mxu3 }
 0x37b   :  { %v625_v30 = vsub.f32 %v545_v2, %v615_v20 }
 0x37d   :  { %v630_v35 = vmul.f32 1.442695, %v625_v30 }
 0x382   :  { %v618_v27 = vpop.f32.mrf.mxu3 }
 0x383   :  { %v626_v28 = vsub.f32 %v548_v5, %v618_v27 }
 0x385   :  { %v632_v33 = vmul.f32 1.442695, %v626_v28 }
 0x38a   :  { %v621_v29 = vpop.f32.mrf.mxu3 }
 0x38b   :  { %v627_v31 = vsub.f32 %v551_v6, %v621_v29 }
 0x38d   :  { %v634_v34 = vmul.f32 1.442695, %v627_v31 }
 0x38f   :  { %1889 = vpow2.f32 %v634_v34 }
 0x390   :  { %1891 = vpow2.f32 %v632_v33 }
 0x391   :  { %1893 = vpow2.f32 %v630_v35 }
 0x392   :  { %1895 = vpow2.f32 %v628_v36 }
 0x395   :  { %v2502_v37 = vpop.eup %1889 }
 0x396   :  { %648 = vmatpush.msra.mxu2 %v2502_v37  ;;  %v2505_v38 = vpop.eup %1891 }
 0x397   :  { %v2508_v39 = vpop.eup %1893 }
 0x398   :  { %649 = vmatpush.msra.mxu2 %v2505_v38  ;;  %v1896_v40 = vpop.eup %1895 }
 0x39a   :  { %650 = vmatpush.msra.mxu2 %v2508_v39 }
 0x39c   :  { %651 = vmatpush.msra.mxu2 %v1896_v40 }
 0x39d   :  { %1758 = vmatmul.msk.f32.vlgmr.msra.gmra.mxu2 %vm512_vm6, %v2480_v9 }
 0x39e   :  { %1769 = vmatpush.msk.msrb.mxu2 %vm307_vm0, %v299_v41 }
 0x3a0   :  { %815 = vmatpush.msrb.mxu2 %v298_v42 }
 0x3a2   :  { %816 = vmatpush.msrb.mxu2 %v297_v44 }
 0x3a5   :  { %1759 = vmatmul.msk.f32.gmra.mxu2 %vm512_vm6, %v2484_v10 }
 0x3ad   :  { %1770 = vmatmul.msk.f32.vlgmr.msrb.gmra.mxu2 %vm300_vm1, %v2397_v7 }
 0x3b5   :  { %1771 = vmatmul.msk.f32.gmra.mxu2 %vm300_vm1, %v2403_v8  ;;  %v2533_v8 = vld [vmem:[%s2212_s30] sm:$0x3]  ;;  %s2762_s30 = sld [smem:[#allocation29_spill]] }
 0x3b6   :  { %1764 = vmatpush.msk.msra.mxu1 %vm765_vm10, %v2533_v8 }
 0x420   :  { %v653_v45 = vpop.f32.mrf.mxu2 }
 0x428   :  { %v656_v46 = vpop.f32.mrf.mxu2 }
 0x429   :  { %673 = vmatpush.msra.mxu0 %v656_v46 }
 0x42b   :  { %674 = vmatpush.msra.mxu0 %v653_v45 }
 0x42c   :  { %1760 = vmatmul.msk.f32.vlgmr.msra.gmra.mxu0 %vm360_vm4, %v2416_v18 }
 0x430   :  { %v818_v7 = vpop.f32.mrf.mxu2 }
 0x434   :  { %1761 = vmatmul.msk.f32.gmra.mxu0 %vm360_vm4, %v2428_v21 }
 0x438   :  { %v821_v47 = vpop.f32.mrf.mxu2 }
 0x439   :  { %838 = vmatpush.msra.mxu3 %v821_v47 }
 0x43b   :  { %839 = vmatpush.msra.mxu3 %v818_v7 }
 0x43c   :  { %1762 = vmatmul.msk.f32.gmra.mxu0 %vm360_vm4, %v2438_v23  ;;  %1772 = vmatmul.msk.f32.vlgmr.msra.gmra.mxu3 %vm360_vm4, %v2419_v19 }
 0x444   :  { %1763 = vmatmul.msk.f32.gmra.mxu0 %vm360_vm4, %v2448_v25  ;;  %1773 = vmatmul.msk.f32.gmra.mxu3 %vm360_vm4, %v2431_v22 }
 0x44c   :  { %1774 = vmatmul.msk.f32.gmra.mxu3 %vm360_vm4, %v2441_v24 }
 0x454   :  { %1775 = vmatmul.msk.f32.gmra.mxu3 %vm360_vm4, %v2451_v26 }
 0x4a9   :  { %v676_v48 = vpop.f32.mrf.mxu0 }
 0x4aa   :  { %v688_v49 = vmax.f32 %v676_v48, 1e-20 }
 0x4ac   :  { %1897 = vrcp.f32 %v688_v49  ;;  %v703_v56 = vand.u32 2147483648, %v688_v49  ;;  %v701_v58 = vand.u32 2147483647, %v688_v49  ;;  %vm697_vm12 = vweird.f32 %v688_v49 }
 0x4ae   :  { %v704_v0 = vor.u32 1.1754944e-38, %v703_v56  ;;  %vm702_vm14 = vcmp.eq.f32.partialorder %v701_v58, 8.507059e+37 }
 0x4b1   :  { %v679_v50 = vpop.f32.mrf.mxu0 }
 0x4b2   :  { %v1898_v52 = vpop.eup %1897  ;;  %v689_v53 = vmax.f32 %v679_v50, 1e-20 }
 0x4b3   :  { %v693_v54 = vmul.f32 %v1898_v52, %v688_v49  ;;  %vm698_vm11 = vweird.f32 %v1898_v52 }
 0x4b4   :  { %1899 = vrcp.f32 %v689_v53  ;;  %vm699_vm13 = vmor %vm697_vm12, %vm698_vm11  ;;  %v718_v12 = vand.u32 2147483648, %v689_v53  ;;  %v716_v15 = vand.u32 2147483647, %v689_v53  ;;  %vm712_vm1 = vweird.f32 %v689_v53 }
 0x4b5   :  { %v694_v55 = vsub.f32 1.0, %v693_v54 }
 0x4b6   :  { %v719_v28 = vor.u32 1.1754944e-38, %v718_v12  ;;  %vm717_vm3 = vcmp.eq.f32.partialorder %v716_v15, 8.507059e+37 }
 0x4b7   :  { %v695_v57 = vmul.f32 %v1898_v52, %v694_v55 }
 0x4b9   :  { %v696_v60 = vadd.f32 %v1898_v52, %v695_v57  ;;  %v682_v61 = vpop.f32.mrf.mxu0 }
 0x4ba   :  { %v1900_v62 = vpop.eup %1899  ;;  %v690_v1 = vmax.f32 %v682_v61, 1e-20  ;;  %v887_v61 = vld [vmem:[%s2758_s13 + $0x18] sm:$0xff] }
 0x4bb   :  { %v708_v2 = vmul.f32 %v1900_v62, %v689_v53  ;;  %v700_v3 = vsel %vm699_vm13, %v1898_v52, %v696_v60  ;;  %vm713_vm0 = vweird.f32 %v1900_v62  ;;  %v883_v60 = vld [vmem:[%s2757_s9 + $0x18] sm:$0xff]  ;;  %942 = vmatpush.msrb.mxu1 %v887_v61 }
 0x4bc   :  { %1901 = vrcp.f32 %v690_v1  ;;  %v705_v4 = vsel %vm702_vm14, %v704_v0, %v700_v3  ;;  %vm714_vm2 = vmor %vm712_vm1, %vm713_vm0  ;;  %v733_v34 = vand.u32 2147483648, %v690_v1  ;;  %v731_v36 = vand.u32 2147483647, %v690_v1  ;;  %919 = vmatpush.msrb.mxu0 %v883_v60  ;;  %v886_v0 = vld [vmem:[%s2758_s13 + $0x10] sm:$0xff]  ;;  %v885_v3 = vld [vmem:[%s2758_s13 + $0x8] sm:$0xff] }
 0x4bd   :  { %v709_v5 = vsub.f32 1.0, %v708_v2  ;;  %v706_v6 = vmul.f32 %v1896_v40, %v705_v4  ;;  %vm727_vm7 = vweird.f32 %v690_v1  ;;  %v881_v2 = vld [vmem:[%s2757_s9 + $0x8] sm:$0xff]  ;;  %943 = vmatpush.msrb.mxu1 %v886_v0 }
 0x4be   :  { %v734_v42 = vor.u32 1.1754944e-38, %v733_v34  ;;  %vm732_vm9 = vcmp.eq.f32.partialorder %v731_v36, 8.507059e+37 }
 0x4bf   :  { %1765 = vmatmul.msk.f32.vlgmr.msra.gmra.mxu1 %vm752_vm15, %v706_v6  ;;  %v710_v14 = vmul.f32 %v1900_v62, %v709_v5  ;;  %v841_v55 = vpop.f32.mrf.mxu3 }
 0x4c0   :  { %944 = vmatpush.msrb.mxu1 %v885_v3 }
 0x4c1   :  { %v685_v16 = vpop.f32.mrf.mxu0  ;;  %v711_v17 = vadd.f32 %v1900_v62, %v710_v14 }
 0x4c2   :  { %v1902_v20 = vpop.eup %1901  ;;  %v691_v27 = vmax.f32 %v685_v16, 1e-20  ;;  %v880_v16 = vld [vmem:[%s2757_s9] sm:$0xff] }
 0x4c3   :  { %v723_v29 = vmul.f32 %v1902_v20, %v690_v1  ;;  %v715_v30 = vsel %vm714_vm2, %v1900_v62, %v711_v17  ;;  %vm728_vm5 = vweird.f32 %v1902_v20  ;;  %v882_v62 = vld [vmem:[%s2757_s9 + $0x10] sm:$0xff]  ;;  %v884_v17 = vld [vmem:[%s2758_s13] sm:$0xff] }
 0x4c4   :  { %1903 = vrcp.f32 %v691_v27  ;;  %v720_v31 = vsel %vm717_vm3, %v719_v28, %v715_v30  ;;  %vm729_vm8 = vmor %vm727_vm7, %vm728_vm5  ;;  %v748_v48 = vand.u32 2147483648, %v691_v27  ;;  %v746_v49 = vand.u32 2147483647, %v691_v27  ;;  %920 = vmatpush.msrb.mxu0 %v882_v62  ;;  %945 = vmatpush.msrb.mxu1 %v884_v17  ;;  %v889_v28 = vld [vmem:[%s2759_s17 + $0x8] sm:$0xff] }
 0x4c5   :  { %v724_v32 = vsub.f32 1.0, %v723_v29  ;;  %v721_v33 = vmul.f32 %v2508_v39, %v720_v31  ;;  %vm742_vm12 = vweird.f32 %v691_v27  ;;  %v888_v29 = vld [vmem:[%s2759_s17] sm:$0xff] }
 0x4c6   :  { %v749_v52 = vor.u32 1.1754944e-38, %v748_v48  ;;  %vm747_vm14 = vcmp.eq.f32.partialorder %v746_v49, 8.507059e+37  ;;  %921 = vmatpush.msrb.mxu0 %v881_v2 }
 0x4c7   :  { %1766 = vmatmul.msk.f32.gmra.mxu1 %vm752_vm15, %v721_v33  ;;  %v725_v35 = vmul.f32 %v1902_v20, %v724_v32  ;;  %v844_v57 = vpop.f32.mrf.mxu3 }
 0x4c8   :  { %922 = vmatpush.msrb.mxu0 %v880_v16 }
 0x4c9   :  { %v726_v40 = vadd.f32 %v1902_v20, %v725_v35 }
 0x4ca   :  { %v1904_v41 = vpop.eup %1903 }
 0x4cb   :  { %v738_v44 = vmul.f32 %v1904_v41, %v691_v27  ;;  %v730_v45 = vsel %vm729_vm8, %v1902_v20, %v726_v40  ;;  %vm743_vm11 = vweird.f32 %v1904_v41  ;;  %v891_v20 = vld [vmem:[%s2759_s17 + $0x18] sm:$0xff]  ;;  %v890_v27 = vld [vmem:[%s2759_s17 + $0x10] sm:$0xff] }
 0x4cc   :  { %v735_v46 = vsel %vm732_vm9, %v734_v42, %v730_v45  ;;  %vm744_vm13 = vmor %vm742_vm12, %vm743_vm11  ;;  %1023 = vmatpush.msra.mxu0 %v891_v20 }
 0x4cd   :  { %v739_v7 = vsub.f32 1.0, %v738_v44  ;;  %v736_v47 = vmul.f32 %v2505_v38, %v735_v46  ;;  %v1883_v44 = vld [vmem:[%s2761_s3] ss:$0 sm:$0xff] }
 0x4ce   :  { %1024 = vmatpush.msra.mxu0 %v890_v27 }
 0x4cf   :  { %1767 = vmatmul.msk.f32.gmra.mxu1 %vm752_vm15, %v736_v47  ;;  %v740_v39 = vmul.f32 %v1904_v41, %v739_v7  ;;  %v847_v1 = vpop.f32.mrf.mxu3 }
 0x4d0   :  { %1025 = vmatpush.msra.mxu0 %v889_v28 }
 0x4d1   :  { %v741_v50 = vadd.f32 %v1904_v41, %v740_v39 }
 0x4d2   :  { %1026 = vmatpush.msra.mxu0 %v888_v29 }
 0x4d3   :  { %v745_v53 = vsel %vm744_vm13, %v1904_v41, %v741_v50 }
 0x4d4   :  { %v750_v54 = vsel %vm747_vm14, %v749_v52, %v745_v53 }
 0x4d5   :  { %v751_v38 = vmul.f32 %v2502_v37, %v750_v54 }
 0x4d7   :  { %1768 = vmatmul.msk.f32.gmra.mxu1 %vm752_vm15, %v751_v38  ;;  %v850_v4 = vpop.f32.mrf.mxu3 }
 0x53c   :  { %v786_v56 = vpop.f32.mrf.mxu1 }
 0x53d   :  { %v853_v15 = vmul.f32 %v841_v55, %v786_v56 }
 0x544   :  { %v789_v58 = vpop.f32.mrf.mxu1 }
 0x545   :  { %v854_v14 = vmul.f32 %v844_v57, %v789_v58 }
 0x54c   :  { %v792_v37 = vpop.f32.mrf.mxu1 }
 0x54d   :  { %v855_v12 = vmul.f32 %v847_v1, %v792_v37 }
 0x554   :  { %v795_v5 = vpop.f32.mrf.mxu1 }
 0x555   :  { %v856_v6 = vmul.f32 %v850_v4, %v795_v5 }
 0x557   :  { %869 = vmatpush.msra.mxu2 %v856_v6 }
 0x559   :  { %870 = vmatpush.msra.mxu2 %v855_v12 }
 0x55b   :  { %871 = vmatpush.msra.mxu2 %v854_v14 }
 0x55d   :  { %872 = vmatpush.msra.mxu2 %v853_v15 }
 0x55e   :  { %1776 = vmatmul.msk.f32.vlgmr.msra.gmra.mxu2 %vm512_vm6, %v2480_v9 }
 0x566   :  { %1777 = vmatmul.msk.f32.gmra.mxu2 %vm512_vm6, %v2484_v10 }
 0x5e1   :  { %v2564_v30 = vpop.f32.mrf.mxu2 }
 0x5e2   :  { %1778 = vmatmul.msk.f32.vlgmr.msrb.gmra.mxu0 %vm512_vm6, %v2564_v30  ;;  %1780 = vmatmul.msk.f32.vlgmr.msrb.gmra.mxu1 %vm512_vm6, %v2564_v30 }
 0x5e9   :  { %v2570_v31 = vpop.f32.mrf.mxu2 }
 0x5ea   :  { %1779 = vmatmul.msk.f32.gmra.mxu0 %vm512_vm6, %v2570_v31  ;;  %1781 = vmatmul.msk.f32.gmra.mxu1 %vm512_vm6, %v2570_v31 }
 0x5f2   :  { %1790 = vmatmul.msk.f32.vlgmr.msra.gmra.mxu0 %vm512_vm6, %v2462_v43  ;;  %v896_v43 = vld [vmem:[%s2760_s25 + $0x18] sm:$0xff] }
 0x5f3   :  { %1087 = vmatpush.msra.mxu1 %v896_v43 }
 0x5fa   :  { %1791 = vmatmul.msk.f32.gmra.mxu0 %vm512_vm6, %v2466_v51  ;;  %v895_v51 = vld [vmem:[%s2760_s25 + $0x10] sm:$0xff] }
 0x5fb   :  { %1088 = vmatpush.msra.mxu1 %v895_v51 }
 0x602   :  { %1792 = vmatmul.msk.f32.gmra.mxu0 %vm512_vm6, %v2470_v59  ;;  %v894_v59 = vld [vmem:[%s2760_s25 + $0x8] sm:$0xff] }
 0x603   :  { %1089 = vmatpush.msra.mxu1 %v894_v59 }
 0x60a   :  { %1793 = vmatmul.msk.f32.gmra.mxu0 %vm512_vm6, %v2474_v63  ;;  %v893_v63 = vld [vmem:[%s2760_s25] sm:$0xff] }
 0x60b   :  { %1090 = vmatpush.msra.mxu1 %v893_v63 }
 0x65f   :  { %v924_v32 = vpop.f32.mrf.mxu0  ;;  %v947_v33 = vpop.f32.mrf.mxu1 }
 0x667   :  { %v927_v34 = vpop.f32.mrf.mxu0  ;;  %v950_v35 = vpop.f32.mrf.mxu1 }
 0x668   :  { %967 = vmatpush.msrb.mxu2 %v950_v35  ;;  %996 = vmatpush.msrb.mxu3 %v927_v34 }
 0x66a   :  { %968 = vmatpush.msrb.mxu2 %v947_v33  ;;  %997 = vmatpush.msrb.mxu3 %v924_v32 }
 0x66b   :  { %1782 = vmatmul.msk.f32.vlgmr.msrb.gmra.mxu2 %vm360_vm4, %v2416_v18  ;;  %1786 = vmatmul.msk.f32.vlgmr.msrb.gmra.mxu3 %vm360_vm4, %v2419_v19 }
 0x66f   :  { %v1028_v36 = vpop.f32.mrf.mxu0 }
 0x673   :  { %1783 = vmatmul.msk.f32.gmra.mxu2 %vm360_vm4, %v2428_v21  ;;  %1787 = vmatmul.msk.f32.gmra.mxu3 %vm360_vm4, %v2431_v22 }
 0x677   :  { %v1031_v46 = vpop.f32.mrf.mxu0 }
 0x67b   :  { %1784 = vmatmul.msk.f32.gmra.mxu2 %vm360_vm4, %v2438_v23  ;;  %1788 = vmatmul.msk.f32.gmra.mxu3 %vm360_vm4, %v2441_v24 }
 0x67f   :  { %v1034_v54 = vpop.f32.mrf.mxu0 }
 0x683   :  { %1785 = vmatmul.msk.f32.gmra.mxu2 %vm360_vm4, %v2448_v25  ;;  %1789 = vmatmul.msk.f32.gmra.mxu3 %vm360_vm4, %v2451_v26 }
 0x687   :  { %v1037_v37 = vpop.f32.mrf.mxu0 }
 0x6ee   :  { %v970_v40 = vpop.f32.mrf.mxu2  ;;  %v999_v41 = vpop.f32.mrf.mxu3 }
 0x6ef   :  { %v1000_v42 = vadd.f32 %v999_v41, %v970_v40 }
 0x6f1   :  { %v1040_v45 = vadd.f32 %v1028_v36, %v1000_v42 }
 0x6f3   :  { %v1047_v7 = vadd.f32 %v1883_v44, %v1040_v45  ;;  %v900_v45 = vld [vmem:[%s2762_s30 + $0x18] sm:$0xff] }
 0x6f5   :  { %v1055_v47 = vmul.f32 0.2, %v1047_v7  ;;  %vm1051_vm0 = vcmp.gt.f32.partialorder %v1047_v7, 0.0 }
 0x6f6   :  { %v973_v48 = vpop.f32.mrf.mxu2  ;;  %v1002_v39 = vpop.f32.mrf.mxu3 }
 0x6f7   :  { %v1003_v49 = vadd.f32 %v1002_v39, %v973_v48  ;;  %v2605_v50 = vsel %vm1051_vm0, %v1047_v7, %v1055_v47  ;;  %v898_v7 = vld [vmem:[%s2762_s30 + $0x8] sm:$0xff]  ;;  %v897_v47 = vld [vmem:[%s2762_s30] sm:$0xff] }
 0x6f8   :  { %1794 = vmatmul.msk.f32.vlgmr.msra.gmra.mxu1 %vm512_vm6, %v2605_v50 }
 0x6f9   :  { %v1041_v52 = vadd.f32 %v1031_v46, %v1003_v49  ;;  %v899_v46 = vld [vmem:[%s2762_s30 + $0x10] sm:$0xff] }
 0x6fb   :  { %v1048_v53 = vadd.f32 %v1883_v44, %v1041_v52 }
 0x6fd   :  { %vm1052_vm1 = vcmp.gt.f32.partialorder %v1048_v53, 0.0  ;;  %v1056_v38 = vmul.f32 0.2, %v1048_v53 }
 0x6fe   :  { %v976_v55 = vpop.f32.mrf.mxu2  ;;  %v1005_v56 = vpop.f32.mrf.mxu3 }
 0x6ff   :  { %v1006_v57 = vadd.f32 %v1005_v56, %v976_v55  ;;  %v2609_v58 = vsel %vm1052_vm1, %v1048_v53, %v1056_v38 }
 0x700   :  { %1795 = vmatmul.msk.f32.gmra.mxu1 %vm512_vm6, %v2609_v58 }
 0x701   :  { %v1042_v60 = vadd.f32 %v1034_v54, %v1006_v57 }
 0x703   :  { %v1049_v61 = vadd.f32 %v1883_v44, %v1042_v60 }
 0x705   :  { %vm1053_vm2 = vcmp.gt.f32.partialorder %v1049_v61, 0.0  ;;  %v1057_v62 = vmul.f32 0.2, %v1049_v61 }
 0x706   :  { %v979_v0 = vpop.f32.mrf.mxu2  ;;  %v1008_v1 = vpop.f32.mrf.mxu3 }
 0x707   :  { %v1009_v2 = vadd.f32 %v1008_v1, %v979_v0  ;;  %v2613_v3 = vsel %vm1053_vm2, %v1049_v61, %v1057_v62 }
 0x708   :  { %1796 = vmatmul.msk.f32.gmra.mxu1 %vm512_vm6, %v2613_v3 }
 0x709   :  { %v1043_v4 = vadd.f32 %v1037_v37, %v1009_v2 }
 0x70b   :  { %v1050_v5 = vadd.f32 %v1883_v44, %v1043_v4 }
 0x70d   :  { %vm1054_vm3 = vcmp.gt.f32.partialorder %v1050_v5, 0.0  ;;  %v1058_v6 = vmul.f32 0.2, %v1050_v5 }
 0x70f   :  { %v2617_v12 = vsel %vm1054_vm3, %v1050_v5, %v1058_v6 }
 0x710   :  { %1797 = vmatmul.msk.f32.gmra.mxu1 %vm512_vm6, %v2617_v12 }
 0x775   :  { %v1092_v14 = vpop.f32.mrf.mxu1 }
 0x77d   :  { %v1095_v15 = vpop.f32.mrf.mxu1 }
 0x785   :  { %v1098_v16 = vpop.f32.mrf.mxu1 }
 0x78d   :  { %v1101_v17 = vpop.f32.mrf.mxu1 }
 0x78e   :  { %1116 = vmatpush.msra.mxu2 %v1101_v17 }
 0x790   :  { %1117 = vmatpush.msra.mxu2 %v1098_v16 }
 0x792   :  { %1118 = vmatpush.msra.mxu2 %v1095_v15 }
 0x794   :  { %1119 = vmatpush.msra.mxu2 %v1092_v14 }
 0x795   :  { %1798 = vmatmul.msk.f32.vlgmr.msra.gmra.mxu2 %vm512_vm6, %v2480_v9 }
 0x796   :  { %1810 = vmatpush.msk.msrb.mxu2 %vm765_vm10, %v2533_v8 }
 0x79d   :  { %1799 = vmatmul.msk.f32.gmra.mxu2 %vm512_vm6, %v2484_v10 }
 0x818   :  { %v1121_v20 = vpop.f32.mrf.mxu2 }
 0x819   :  { %v1127_v29 = vmul.f32 %v1121_v20, %v2490_v13 }
 0x820   :  { %v1124_v27 = vpop.f32.mrf.mxu2 }
 0x821   :  { %v1128_v28 = vmul.f32 %v1124_v27, %v2488_v11 }
 0x823   :  { %1143 = vmatpush.msra.mxu3 %v1128_v28 }
 0x825   :  { %1144 = vmatpush.msra.mxu3 %v1127_v29 }
 0x826   :  { %1800 = vmatmul.msk.f32.vlgmr.msra.gmra.mxu3 %vm360_vm4, %v2416_v18 }
 0x82e   :  { %1801 = vmatmul.msk.f32.gmra.mxu3 %vm360_vm4, %v2428_v21 }
 0x836   :  { %1802 = vmatmul.msk.f32.gmra.mxu3 %vm360_vm4, %v2438_v23 }
 0x83e   :  { %1803 = vmatmul.msk.f32.gmra.mxu3 %vm360_vm4, %v2448_v25 }
 0x8a9   :  { %v1146_v8 = vpop.f32.mrf.mxu3 }
 0x8aa   :  { %v1158_v43 = vsub.f32 %v1092_v14, %v1146_v8 }
 0x8ac   :  { %v1162_v36 = vmul.f32 1.442695, %v1158_v43 }
 0x8b1   :  { %v1149_v32 = vpop.f32.mrf.mxu3 }
 0x8b2   :  { %v1159_v13 = vsub.f32 %v1095_v15, %v1149_v32 }
 0x8b4   :  { %v1164_v63 = vmul.f32 1.442695, %v1159_v13 }
 0x8b9   :  { %v1152_v33 = vpop.f32.mrf.mxu3 }
 0x8ba   :  { %v1160_v11 = vsub.f32 %v1098_v16, %v1152_v33 }
 0x8bc   :  { %v1166_v51 = vmul.f32 1.442695, %v1160_v11 }
 0x8c1   :  { %v1155_v34 = vpop.f32.mrf.mxu3 }
 0x8c2   :  { %v1161_v35 = vsub.f32 %v1101_v17, %v1155_v34 }
 0x8c4   :  { %v1168_v59 = vmul.f32 1.442695, %v1161_v35 }
 0x8c6   :  { %1905 = vpow2.f32 %v1168_v59 }
 0x8c7   :  { %1907 = vpow2.f32 %v1166_v51 }
 0x8c8   :  { %1909 = vpow2.f32 %v1164_v63 }
 0x8c9   :  { %1911 = vpow2.f32 %v1162_v36 }
 0x8cc   :  { %v2637_v40 = vpop.eup %1905 }
 0x8cd   :  { %1182 = vmatpush.msrb.mxu0 %v2637_v40  ;;  %v2640_v41 = vpop.eup %1907 }
 0x8ce   :  { %v2643_v42 = vpop.eup %1909 }
 0x8cf   :  { %1183 = vmatpush.msrb.mxu0 %v2640_v41  ;;  %v1912_v44 = vpop.eup %1911 }
 0x8d1   :  { %1184 = vmatpush.msrb.mxu0 %v2643_v42 }
 0x8d3   :  { %1185 = vmatpush.msrb.mxu0 %v1912_v44 }
 0x8d4   :  { %1804 = vmatmul.msk.f32.vlgmr.msrb.gmra.mxu0 %vm512_vm6, %v2480_v9 }
 0x8d5   :  { %1339 = vmatpush.msra.mxu0 %v900_v45 }
 0x8d7   :  { %1340 = vmatpush.msra.mxu0 %v899_v46 }
 0x8d9   :  { %1341 = vmatpush.msra.mxu0 %v898_v7 }
 0x8db   :  { %1342 = vmatpush.msra.mxu0 %v897_v47 }
 0x8dc   :  { %1805 = vmatmul.msk.f32.gmra.mxu0 %vm512_vm6, %v2484_v10 }
 0x8e4   :  { %1815 = vmatmul.msk.f32.vlgmr.msra.gmra.mxu0 %vm512_vm6, %v2564_v30 }
 0x8ec   :  { %1816 = vmatmul.msk.f32.gmra.mxu0 %vm512_vm6, %v2570_v31 }
 0x951   :  { %v1187_v48 = vpop.f32.mrf.mxu0 }
 0x959   :  { %v1190_v39 = vpop.f32.mrf.mxu0 }
 0x95a   :  { %1207 = vmatpush.msrb.mxu1 %v1190_v39 }
 0x95c   :  { %1208 = vmatpush.msrb.mxu1 %v1187_v48 }
 0x95d   :  { %1806 = vmatmul.msk.f32.vlgmr.msrb.gmra.mxu1 %vm360_vm4, %v2416_v18 }
 0x961   :  { %v1344_v49 = vpop.f32.mrf.mxu0 }
 0x965   :  { %1807 = vmatmul.msk.f32.gmra.mxu1 %vm360_vm4, %v2428_v21 }
 0x969   :  { %v1347_v52 = vpop.f32.mrf.mxu0 }
 0x96a   :  { %1364 = vmatpush.msrb.mxu3 %v1347_v52 }
 0x96c   :  { %1365 = vmatpush.msrb.mxu3 %v1344_v49 }
 0x96d   :  { %1808 = vmatmul.msk.f32.gmra.mxu1 %vm360_vm4, %v2438_v23  ;;  %1817 = vmatmul.msk.f32.vlgmr.msrb.gmra.mxu3 %vm360_vm4, %v2419_v19 }
 0x975   :  { %1809 = vmatmul.msk.f32.gmra.mxu1 %vm360_vm4, %v2448_v25  ;;  %1818 = vmatmul.msk.f32.gmra.mxu3 %vm360_vm4, %v2431_v22 }
 0x97d   :  { %1819 = vmatmul.msk.f32.gmra.mxu3 %vm360_vm4, %v2441_v24 }
 0x985   :  { %1820 = vmatmul.msk.f32.gmra.mxu3 %vm360_vm4, %v2451_v26 }
 0x9da   :  { %v1210_v18 = vpop.f32.mrf.mxu1 }
 0x9db   :  { %v1222_v21 = vmax.f32 %v1210_v18, 1e-20 }
 0x9dd   :  { %1913 = vrcp.f32 %v1222_v21  ;;  %v1237_v54 = vand.u32 2147483648, %v1222_v21  ;;  %v1235_v38 = vand.u32 2147483647, %v1222_v21  ;;  %vm1231_vm5 = vweird.f32 %v1222_v21 }
 0x9df   :  { %v1238_v56 = vor.u32 1.1754944e-38, %v1237_v54  ;;  %vm1236_vm8 = vcmp.eq.f32.partialorder %v1235_v38, 8.507059e+37  ;;  %v1456_v54 = vld [vmem:[%s2763_s27 + $0x10] sm:$0xff] }
 0x9e2   :  { %v1213_v30 = vpop.f32.mrf.mxu1 }
 0x9e3   :  { %v1914_v23 = vpop.eup %1913  ;;  %v1223_v31 = vmax.f32 %v1213_v30, 1e-20 }
 0x9e4   :  { %v1227_v53 = vmul.f32 %v1914_v23, %v1222_v21  ;;  %vm1232_vm10 = vweird.f32 %v1914_v23 }
 0x9e5   :  { %1915 = vrcp.f32 %v1223_v31  ;;  %vm1233_vm7 = vmor %vm1231_vm5, %vm1232_vm10  ;;  %v1252_v1 = vand.u32 2147483648, %v1223_v31  ;;  %v1250_v37 = vand.u32 2147483647, %v1223_v31  ;;  %vm1246_vm11 = vweird.f32 %v1223_v31 }
 0x9e6   :  { %v1228_v19 = vsub.f32 1.0, %v1227_v53 }
 0x9e7   :  { %v1253_v15 = vor.u32 1.1754944e-38, %v1252_v1  ;;  %vm1251_vm13 = vcmp.eq.f32.partialorder %v1250_v37, 8.507059e+37  ;;  %v1539_v1 = vld [vmem:[#allocation13 + $0x10] sm:$0xff]  ;;  %v1538_v37 = vld [vmem:[#allocation13 + $0x8] sm:$0xff] }
 0x9e8   :  { %v1229_v25 = vmul.f32 %v1914_v23, %v1228_v19  ;;  %v1457_v19 = vld [vmem:[%s2763_s27 + $0x18] sm:$0xff] }
 0x9e9   :  { %1484 = vmatpush.msra.mxu2 %v1457_v19 }
 0x9ea   :  { %v1230_v22 = vadd.f32 %v1914_v23, %v1229_v25  ;;  %v1216_v55 = vpop.f32.mrf.mxu1  ;;  %v1455_v25 = vld [vmem:[%s2763_s27 + $0x8] sm:$0xff] }
 0x9eb   :  { %v1916_v24 = vpop.eup %1915  ;;  %v1224_v26 = vmax.f32 %v1216_v55, 1e-20  ;;  %1485 = vmatpush.msra.mxu2 %v1456_v54  ;;  %v1406_v55 = vld [vmem:[%s2764_s4] sm:$0x3] }
 0x9ec   :  { %v1242_v57 = vmul.f32 %v1916_v24, %v1223_v31  ;;  %v1234_v60 = vsel %vm1233_vm7, %v1914_v23, %v1230_v22  ;;  %vm1247_vm9 = vweird.f32 %v1916_v24 }
 0x9ed   :  { %1917 = vrcp.f32 %v1224_v26  ;;  %v1239_v61 = vsel %vm1236_vm8, %v1238_v56, %v1234_v60  ;;  %vm1248_vm12 = vmor %vm1246_vm11, %vm1247_vm9  ;;  %v1267_v29 = vand.u32 2147483648, %v1224_v26  ;;  %v1265_v32 = vand.u32 2147483647, %v1224_v26  ;;  %1486 = vmatpush.msra.mxu2 %v1455_v25  ;;  %v1494_v56 = vld [vmem:[%s2766_s22 + $0x10] sm:$0xff]  ;;  %v1536_v60 = vld [vmem:[%s2769_s28 + $0x18] sm:$0xff] }
 0x9ee   :  { %v1243_v62 = vsub.f32 1.0, %v1242_v57  ;;  %v1240_v0 = vmul.f32 %v1912_v44, %v1239_v61  ;;  %vm1261_vm0 = vweird.f32 %v1224_v26  ;;  %v1535_v61 = vld [vmem:[%s2769_s28 + $0x10] sm:$0xff]  ;;  %vm1588_vm8 = vcmask 31744  }
 0x9ef   :  { %v1268_v34 = vor.u32 1.1754944e-38, %v1267_v29  ;;  %vm1266_vm2 = vcmp.eq.f32.partialorder %v1265_v32, 8.507059e+37  ;;  %vm1682_vm9 = vcmask 1024  }
 0x9f0   :  { %1811 = vmatmul.msk.f32.vlgmr.msrb.gmra.mxu2 %vm752_vm15, %v1240_v0  ;;  %v1244_v2 = vmul.f32 %v1916_v24, %v1243_v62  ;;  %v1367_v48 = vpop.f32.mrf.mxu3  ;;  %v1540_v62 = vld [vmem:[#allocation13 + $0x18] sm:$0xff]  ;;  %v1534_v0 = vld [vmem:[%s2769_s28 + $0x8] sm:$0xff] }
 0x9f2   :  { %v1219_v4 = vpop.f32.mrf.mxu1  ;;  %v1245_v5 = vadd.f32 %v1916_v24, %v1244_v2  ;;  %v1533_v2 = vld [vmem:[%s2769_s28] sm:$0xff] }
 0x9f3   :  { %v1918_v6 = vpop.eup %1917  ;;  %v1225_v14 = vmax.f32 %v1219_v4, 1e-20  ;;  %v1537_v4 = vld [vmem:[#allocation13] sm:$0xff] }
 0x9f4   :  { %v1257_v16 = vmul.f32 %v1918_v6, %v1224_v26  ;;  %v1249_v17 = vsel %vm1248_vm12, %v1916_v24, %v1245_v5  ;;  %vm1262_vm14 = vweird.f32 %v1918_v6  ;;  %v1495_v24 = vld [vmem:[%s2766_s22 + $0x18] sm:$0xff]  ;;  %v1458_v26 = vld [vmem:[%s2767_s21] sm:$0x3] }
 0x9f5   :  { %1919 = vrcp.f32 %v1225_v14  ;;  %v1254_v20 = vsel %vm1251_vm13, %v1253_v15, %v1249_v17  ;;  %vm1263_vm1 = vmor %vm1261_vm0, %vm1262_vm14  ;;  %v1282_v63 = vand.u32 2147483648, %v1225_v14  ;;  %vm1276_vm10 = vweird.f32 %v1225_v14  ;;  %1462 = vperm.xlu1 %1881, %v1458_v26   ;;  %v1587_v5 = vld [vmem:[%s2770_s2] sm:$0xf] }
 0x9f6   :  { %v1258_v27 = vsub.f32 1.0, %v1257_v16  ;;  %v1255_v28 = vmul.f32 %v2643_v42, %v1254_v20  ;;  %v1280_v42 = vand.u32 2147483647, %v1225_v14  ;;  %v1884_v17 = vld [vmem:[%s2773_s11] ss:$0 sm:$0xff] }
 0x9f7   :  { %v1283_v45 = vor.u32 1.1754944e-38, %v1282_v63  ;;  %v1885_v20 = vld [vmem:[%s2774_s7] ss:$0 sm:$0xff] }
 0x9f8   :  { %1812 = vmatmul.msk.f32.gmra.mxu2 %vm752_vm15, %v1255_v28  ;;  %v1259_v8 = vmul.f32 %v1918_v6, %v1258_v27  ;;  %vm1281_vm7 = vcmp.eq.f32.partialorder %v1280_v42, 8.507059e+37  ;;  %v1886_v42 = vld [vmem:[%s2776_s12] ss:$0 sm:$0xff] }
 0x9fa   :  { %v1260_v33 = vadd.f32 %v1918_v6, %v1259_v8 }
 0x9fb   :  { %v1920_v11 = vpop.eup %1919 }
 0x9fc   :  { %v1272_v13 = vmul.f32 %v1920_v11, %v1225_v14  ;;  %v1264_v35 = vsel %vm1263_vm1, %v1918_v6, %v1260_v33  ;;  %vm1277_vm3 = vweird.f32 %v1920_v11  ;;  %v1530_v6 = vld [vmem:[%s2771_s5] sm:$0x3] }
 0x9fd   :  { %v1269_v43 = vsel %vm1266_vm2, %v1268_v34, %v1264_v35  ;;  %vm1278_vm5 = vmor %vm1276_vm10, %vm1277_vm3  ;;  %v1531_v14 = vld [vmem:[%s2772_s10] sm:$0x3]  ;;  %v1625_v34 = vld [vmem:[%s2775_s16 + $0x18] sm:$0xff] }
 0x9fe   :  { %v1273_v51 = vsub.f32 1.0, %v1272_v13  ;;  %v1270_v59 = vmul.f32 %v2640_v41, %v1269_v43  ;;  %v1370_v41 = vpop.f32.mrf.mxu3  ;;  %v1532_v15 = vsub.f32 %v1530_v6, %v1531_v14  ;;  %v1624_v13 = vld [vmem:[%s2775_s16 + $0x10] sm:$0xff]  ;;  %v1623_v35 = vld [vmem:[%s2775_s16 + $0x8] sm:$0xff]  ;;  %v1622_v43 = vld [vmem:[%s2775_s16] sm:$0xff] }
 0xa00   :  { %1813 = vmatmul.msk.f32.gmra.mxu2 %vm752_vm15, %v1270_v59  ;;  %v1274_v36 = vmul.f32 %v1920_v11, %v1273_v51 }
 0xa02   :  { %v1275_v44 = vadd.f32 %v1920_v11, %v1274_v36 }
 0xa04   :  { %v1279_v46 = vsel %vm1278_vm5, %v1920_v11, %v1275_v44 }
 0xa05   :  { %v1284_v7 = vsel %vm1281_vm7, %v1283_v45, %v1279_v46  ;;  %v1654_v46 = vld [vmem:[%s2327_s29 + $0x8] sm:$0xff] }
 0xa06   :  { %v1285_v47 = vmul.f32 %v2637_v40, %v1284_v7  ;;  %v1373_v52 = vpop.f32.mrf.mxu3  ;;  %v1653_v7 = vld [vmem:[%s2327_s29] sm:$0xff] }
 0xa08   :  { %1814 = vmatmul.msk.f32.gmra.mxu2 %vm752_vm15, %v1285_v47  ;;  %vm1592_vm15 = vcmask 1043456   ;;  %v1887_v47 = vld [vmem:[%s2322_s24] ss:$0 sm:$0xff] }
 0xa0e   :  { %v1376_v21 = vpop.f32.mrf.mxu3 }
 0xa67   :  { %v1463_v16 = vpop.permute.xlu1 %1462 }
 0xa68   :  { %v1468_v28 = vmul.f32 %v1884_v17, %v1463_v16 }
 0xa73   :  { %v1315_v39 = vpop.f32.mrf.mxu2 }
 0xa74   :  { %v1379_v40 = vmul.f32 %v1367_v48, %v1315_v39 }
 0xa7b   :  { %v1318_v49 = vpop.f32.mrf.mxu2 }
 0xa7c   :  { %v1380_v53 = vmul.f32 %v1370_v41, %v1318_v49  ;;  %v1888_v41 = vld [vmem:[#allocation2] ss:$0 sm:$0xff] }
 0xa83   :  { %v1321_v18 = vpop.f32.mrf.mxu2 }
 0xa84   :  { %v1381_v31 = vmul.f32 %v1373_v52, %v1321_v18 }
 0xa8b   :  { %v1324_v30 = vpop.f32.mrf.mxu2 }
 0xa8c   :  { %v1382_v23 = vmul.f32 %v1376_v21, %v1324_v30 }
 0xa8e   :  { %1395 = vmatpush.msrb.mxu0 %v1382_v23 }
 0xa90   :  { %1396 = vmatpush.msrb.mxu0 %v1381_v31 }
 0xa92   :  { %1397 = vmatpush.msrb.mxu0 %v1380_v53 }
 0xa94   :  { %1398 = vmatpush.msrb.mxu0 %v1379_v40 }
 0xa95   :  { %1821 = vmatmul.msk.f32.vlgmr.msrb.gmra.mxu0 %vm512_vm6, %v2480_v9  ;;  %v1430_v9 = vld [vmem:[%s2765_s18] sm:$0x3] }
 0xa96   :  { %1522 = vmatpush.msra.mxu0 %v1495_v24 }
 0xa98   :  { %1523 = vmatpush.msra.mxu0 %v1494_v56 }
 0xa9d   :  { %1822 = vmatmul.msk.f32.gmra.mxu0 %vm512_vm6, %v2484_v10  ;;  %v1454_v10 = vld [vmem:[%s2763_s27] sm:$0xff] }
 0xa9e   :  { %1487 = vmatpush.msra.mxu2 %v1454_v10 }
 0xaa0   :  { %1579 = vmatpush.msrb.mxu2 %v1536_v60 }
 0xaa2   :  { %1580 = vmatpush.msrb.mxu2 %v1535_v61 }
 0xaa4   :  { %1581 = vmatpush.msrb.mxu2 %v1534_v0 }
 0xaa6   :  { %1582 = vmatpush.msrb.mxu2 %v1533_v2 }
 0xb12   :  { %v1400_v38 = vpop.f32.mrf.mxu0 }
 0xb1a   :  { %v1403_v22 = vpop.f32.mrf.mxu0 }
 0xb1b   :  { %1424 = vmatpush.msra.mxu1 %v1403_v22 }
 0xb1d   :  { %1425 = vmatpush.msra.mxu1 %v1400_v38 }
 0xb1e   :  { %1823 = vmatmul.msk.f32.vlgmr.msra.gmra.mxu1 %vm360_vm4, %v1406_v55 }
 0xb1f   :  { %1446 = vmatpush.msrb.mxu1 %v2617_v12  ;;  %v1493_v12 = vld [vmem:[%s2766_s22 + $0x8] sm:$0xff] }
 0xb20   :  { %1524 = vmatpush.msra.mxu0 %v1493_v12 }
 0xb21   :  { %1447 = vmatpush.msrb.mxu1 %v2613_v3  ;;  %v1496_v3 = vld [vmem:[%s2768_s1] sm:$0x3] }
 0xb22   :  { %1500 = vperm.xlu1 %1881, %v1496_v3  }
 0xb23   :  { %1448 = vmatpush.msrb.mxu1 %v2609_v58  ;;  %v1492_v58 = vld [vmem:[%s2766_s22] sm:$0xff] }
 0xb24   :  { %1525 = vmatpush.msra.mxu0 %v1492_v58 }
 0xb25   :  { %1449 = vmatpush.msrb.mxu1 %v2605_v50 }
 0xb26   :  { %1824 = vmatmul.msk.f32.vlgmr.msrb.gmra.mxu1 %vm512_vm6, %v1430_v9  ;;  %1829 = vmatpush.msk.msrb.mxu0 %vm1592_vm15, %v1587_v5 }
 0xb27   :  { %1556 = vmatpush.msra.mxu1 %v1540_v62 }
 0xb29   :  { %1557 = vmatpush.msra.mxu1 %v1539_v1 }
 0xb2b   :  { %1558 = vmatpush.msra.mxu1 %v1538_v37 }
 0xb2d   :  { %1559 = vmatpush.msra.mxu1 %v1537_v4 }
 0xb2f   :  { %1645 = vmatpush.msrb.mxu1 %v1625_v34 }
 0xb31   :  { %1646 = vmatpush.msrb.mxu1 %v1624_v13 }
 0xb33   :  { %1647 = vmatpush.msrb.mxu1 %v1623_v35 }
 0xb35   :  { %1648 = vmatpush.msrb.mxu1 %v1622_v43 }
 0xb94   :  { %v1501_v27 = vpop.permute.xlu1 %1500 }
 0xb95   :  { %v1506_v32 = vmul.f32 %v1885_v20, %v1501_v27 }
 0xb9b   :  { %v1427_v50 = vpop.f32.mrf.mxu1 }
 0xb9c   :  { %1825 = vmatmul.msk.f32.vlgmr.msra.gmra.mxu2 %vm512_vm6, %v1427_v50 }
 0xb9d   :  { %1676 = vmatpush.msra.mxu2 %v1654_v46 }
 0xb9f   :  { %1677 = vmatpush.msra.mxu2 %v1653_v7 }
 0xba3   :  { %v1451_v57 = vpop.f32.mrf.mxu1 }
 0xba4   :  { %1826 = vmatmul.msk.f32.vlgmr.msra.gmra.mxu0 %vm512_vm6, %v1451_v57 }
 0xbac   :  { %1830 = vmatmul.msk.f32.vlgmr.msrb.gmra.mxu0 %vm1588_vm8, %v1532_v15 }
 0xc1f   :  { %v1489_v29 = vpop.f32.mrf.mxu2 }
 0xc20   :  { %v1490_v8 = vadd.f32 %v1489_v29, %v1468_v28 }
 0xc21   :  { %v1527_v33 = vpop.f32.mrf.mxu0 }
 0xc22   :  { %1828 = vmatmul.msk.f32.vlgmr.msrb.gmra.mxu2 %vm512_vm6, %v1490_v8  ;;  %v1528_v11 = vadd.f32 %v1527_v33, %v1506_v32 }
 0xc24   :  { %1827 = vmatmul.msk.f32.vlgmr.msra.gmra.mxu1 %vm512_vm6, %v1528_v11 }
 0xc29   :  { %v1613_v51 = vpop.f32.mrf.mxu0 }
 0xca1   :  { %v1561_v59 = vpop.f32.mrf.mxu1 }
 0xca5   :  { %v1584_v63 = vpop.f32.mrf.mxu2 }
 0xca6   :  { %v1585_v36 = vadd.f32 %v1584_v63, %v1561_v59 }
 0xca8   :  { %v1616_v44 = vadd.f32 %v1613_v51, %v1585_v36 }
 0xcaa   :  { %v1621_v45 = vadd.f32 %v1886_v42, %v1616_v44 }
 0xcac   :  { %1831 = vmatmul.msk.f32.vlgmr.msrb.gmra.mxu1 %vm512_vm6, %v1621_v45 }
 0xd29   :  { %v1650_v48 = vpop.f32.mrf.mxu1 }
 0xd2a   :  { %v1651_v39 = vadd.f32 %v1887_v47, %v1650_v48 }
 0xd2c   :  { %1832 = vmatmul.msk.f32.vlgmr.msra.gmra.mxu2 %vm360_vm4, %v1651_v39 }
 0xdaf   :  { %v1679_v49 = vpop.f32.mrf.mxu2 }
 0xdb0   :  { %v1680_v52 = vadd.f32 %v1888_v41, %v1679_v49 }
 0xdb2   :  { %1683 = vst.msk [vmem:[%s2335_s8] sm:$0x3] %vm1682_vm9, %v1680_v52 }
 0xdb3   :  { %1688 = vsyncpa [#allocation4], 1 }
 0xdb4   :  { %1689 = vsyncpa [#allocation6], 1 }
 0xdb5   :  { %1690 = vsyncpa [#allocation9], 1 }
 0xdb6   :  { %1691 = vsyncpa [#allocation12], 1 }

</bundles_post_ra>
